<compile_context>
chip_gen: v7x
topology: tpu7x:2x2x1
jax: 0.10.0
libtpu: 0.0.40
codegen_flags: <defaults>
</compile_context>

<pallas_src>
import functools

import jax
import jax.numpy as jnp
from jax import lax
from jax.experimental import pallas as pl
from jax.experimental.pallas import tpu as pltpu

HIDDEN = 128      # nn.RNN default hidden_size in the module
NUM_LAYERS = 2    # two explicit layers, fused via the wavefront schedule


def rnn_classifier_kernel(x_ref, wih0_ref, b0_ref, wpk_ref, b1_ref,
                          wfc_ref, bfc_ref, out_ref, z_ref, *, split_rhs):
    # x_ref:   (T, Bb, 1)  time-major input slab for this batch tile
    # wih0:    (1, H)      layer-0 input weight, transposed (input_size == 1)
    # b0:      (1, H)      b_ih0 + b_hh0 folded
    # wpk:     (2H, 2H)    packed recurrent weight [[Whh0, Wih1], [0, Whh1]] (pre-transposed)
    # b1:      (1, H)      b_ih1 + b_hh1 folded
    # wfc:     (H, 1)      fc weight transposed
    # bfc:     (1, 1)      fc bias
    # out:     (Bb, 1)
    # z_ref:   (Bb, 2H)    VMEM scratch holding the wavefront state
    T, Bb, _ = x_ref.shape
    H = wih0_ref.shape[1]

    wih0 = wih0_ref[...]                                   # (1, H) tiny
    b0 = b0_ref[...]                                       # (1, H)
    b1_b = jnp.broadcast_to(b1_ref[...], (Bb, H))          # hoisted broadcast (loop-invariant)

    # --- Prologue: z(0) = [h0(0), h1(-1)] = [tanh(x0*Wih0^T + b0), 0] ---
    z_ref[:, :H] = jnp.tanh(x_ref[0] * wih0 + b0)
    z_ref[:, H:] = jnp.zeros((Bb, H), jnp.float32)

    # --- Wavefront steps s = 0 .. T-2 (both halves needed) ---
    def step(s, carry):
        # Input projection for timestep s+1: independent of z -> off critical path.
        u_next = x_ref[s + 1] * wih0 + b0                  # (Bb, H)
        if split_rhs:
            # v5e: 4x128x128 MXUs -> avoid the all-zero quadrant of the packed RHS.
            z0 = z_ref[:, :H]                              # h0(s)
            z1 = z_ref[:, H:]                              # h1(s-1)
            left = jnp.dot(z0, wpk_ref[:H, :H], preferred_element_type=jnp.float32)
            right = (jnp.dot(z0, wpk_ref[:H, H:], preferred_element_type=jnp.float32)
                     + jnp.dot(z1, wpk_ref[H:, H:], preferred_element_type=jnp.float32))
        else:
            # v6e/v7x: one native 256x256 MXU pass. RHS indexed at point of use.
            zz = jnp.dot(z_ref[...], wpk_ref[...], preferred_element_type=jnp.float32)
            left = zz[:, :H]
            right = zz[:, H:]
        # Lane-aligned half writes straight into the scratch (no concat copies).
        z_ref[:, :H] = jnp.tanh(left + u_next)             # h0(s+1)
        z_ref[:, H:] = jnp.tanh(right + b1_b)              # h1(s)
        return carry

    lax.fori_loop(0, T - 1, step, 0, unroll=(T <= 17))

    # --- Final step s = T-1: only h1(T-1) (right half) is needed ---
    if split_rhs:
        right = (jnp.dot(z_ref[:, :H], wpk_ref[:H, H:], preferred_element_type=jnp.float32)
                 + jnp.dot(z_ref[:, H:], wpk_ref[H:, H:], preferred_element_type=jnp.float32))
    else:
        right = jnp.dot(z_ref[...], wpk_ref[:, H:], preferred_element_type=jnp.float32)
    h1_last = jnp.tanh(right + b1_b)                       # (Bb, H)

    logits = (jnp.dot(h1_last, wfc_ref[...], preferred_element_type=jnp.float32)
              + bfc_ref[...])
    # sigmoid(x) = 1 / (1 + exp(-x)); exp + reciprocal (EUP) instead of a VPU divide.
    out_ref[...] = pl.reciprocal(1.0 + jnp.exp(-logits), approx=False)


def _round_up(v, m):
    return (v + m - 1) // m * m


def _num_tensorcores():
    """2 on v7x (two TCs per chip), 1 on v5e/v6e. Best-effort detection."""
    try:
        kind = jax.devices()[0].device_kind.lower()
        if "v7" in kind:
            return 2
    except Exception:
        pass
    return 1


def _use_split_matmul():
    """True on v5e, where the 256x256 packed RHS wastes a zero quadrant."""
    try:
        kind = jax.devices()[0].device_kind.lower()
    except Exception:
        return False
    return ("v5 lite" in kind) or ("v5e" in kind) or ("v5litepod" in kind)


def rnn_binary_classifier_forward(x, params):
    """x: (B, T, 1) float32, batch_first (PyTorch convention)."""
    (w_ih0, w_hh0, b_ih0, b_hh0,
     w_ih1, w_hh1, b_ih1, b_hh1,
     w_fc, b_fc) = params
    B, T, _ = x.shape
    H = w_hh0.shape[0]

    # ---- batch tiling: parallel axis >=2 only where there are >=2 TensorCores ----
    MAX_TILE = 128                         # bounds vreg pressure with scratch state
    B_pad = max(8, _round_up(B, 8))
    n_tc = _num_tensorcores()
    if n_tc > 1 and B_pad >= 16:
        bB = min(MAX_TILE, _round_up((B_pad + n_tc - 1) // n_tc, 8))
    elif B_pad > MAX_TILE:
        bB = MAX_TILE
    else:
        bB = B_pad
    B_pad = _round_up(B_pad, bB)

    # ---- pure layout glue: time-major, batch padded ----
    x_tb = jnp.transpose(x, (1, 0, 2))                     # (T, B, 1)
    x_tb = jnp.pad(x_tb, ((0, 0), (0, B_pad - B), (0, 0)))

    # ---- weight packing (pure glue, no data-dependent compute) ----
    wih0 = w_ih0.T                                         # (1, H)
    b0 = (b_ih0 + b_hh0)[None, :]                          # (1, H)
    b1 = (b_ih1 + b_hh1)[None, :]                          # (1, H)
    zero_hh = jnp.zeros((H, H), jnp.float32)
    # z = [h0, h1_prev]; z @ W_packed = [h0@Whh0^T , h0@Wih1^T + h1_prev@Whh1^T]
    w_packed = jnp.concatenate(
        [jnp.concatenate([w_hh0.T, w_ih1.T], axis=1),
         jnp.concatenate([zero_hh, w_hh1.T], axis=1)], axis=0)   # (2H, 2H)
    wfc = w_fc.T                                           # (H, 1)
    bfc = b_fc[None, :]                                    # (1, 1)

    kernel = functools.partial(rnn_classifier_kernel, split_rhs=_use_split_matmul())
    const = lambda i: (0, 0)                               # weights stay VMEM-resident
    out = pl.pallas_call(
        kernel,
        out_shape=jax.ShapeDtypeStruct((B_pad, 1), jnp.float32),
        grid=(B_pad // bB,),
        in_specs=[
            pl.BlockSpec((T, bB, 1), lambda i: (0, i, 0)),  # x tile (time-major)
            pl.BlockSpec((1, H), const),                    # wih0
            pl.BlockSpec((1, H), const),                    # b0
            pl.BlockSpec((2 * H, 2 * H), const),            # packed recurrent weight
            pl.BlockSpec((1, H), const),                    # b1
            pl.BlockSpec((H, 1), const),                    # wfc
            pl.BlockSpec((1, 1), const),                    # bfc
        ],
        out_specs=pl.BlockSpec((bB, 1), lambda i: (i, 0)),
        scratch_shapes=[pltpu.VMEM((bB, 2 * H), jnp.float32)],   # wavefront state z
        compiler_params=pltpu.CompilerParams(
            dimension_semantics=("parallel",)),
    )(x_tb, wih0, b0, w_packed, b1, wfc, bfc)
    return out[:B]


def reference_forward(x, params):
    """Pure-JAX reference mirroring torch.nn.RNN(batch_first=True) + Linear + Sigmoid."""
    (w_ih0, w_hh0, b_ih0, b_hh0,
     w_ih1, w_hh1, b_ih1, b_hh1,
     w_fc, b_fc) = params
    B, T, _ = x.shape
    H = w_hh0.shape[0]
    h0 = jnp.zeros((B, H), jnp.float32)
    h1 = jnp.zeros((B, H), jnp.float32)
    for t in range(T):
        x_t = x[:, t, :]                                   # (B, 1)
        h0 = jnp.tanh(x_t @ w_ih0.T + b_ih0 + h0 @ w_hh0.T + b_hh0)
        h1 = jnp.tanh(h0 @ w_ih1.T + b_ih1 + h1 @ w_hh1.T + b_hh1)
    return jax.nn.sigmoid(h1 @ w_fc.T + b_fc)              # (B, 1)


def init_params(key, hidden=HIDDEN):
    """Deterministic init matching PyTorch shapes (uniform +/- 1/sqrt(H))."""
    k = 1.0 / jnp.sqrt(float(hidden))
    ks = jax.random.split(key, 10)
    u = lambda kk, shape: jax.random.uniform(kk, shape, jnp.float32, -k, k)
    w_ih0 = u(ks[0], (hidden, 1))        # rnn.weight_ih_l0
    w_hh0 = u(ks[1], (hidden, hidden))   # rnn.weight_hh_l0
    b_ih0 = u(ks[2], (hidden,))          # rnn.bias_ih_l0
    b_hh0 = u(ks[3], (hidden,))          # rnn.bias_hh_l0
    w_ih1 = u(ks[4], (hidden, hidden))   # rnn.weight_ih_l1
    w_hh1 = u(ks[5], (hidden, hidden))   # rnn.weight_hh_l1
    b_ih1 = u(ks[6], (hidden,))          # rnn.bias_ih_l1
    b_hh1 = u(ks[7], (hidden,))          # rnn.bias_hh_l1
    w_fc = u(ks[8], (1, hidden))         # fc.weight
    b_fc = u(ks[9], (1,))                # fc.bias
    return (w_ih0, w_hh0, b_ih0, b_hh0, w_ih1, w_hh1, b_ih1, b_hh1, w_fc, b_fc)


if __name__ == "__main__":
    key = jax.random.PRNGKey(0)
    kp, kx = jax.random.split(key)
    params = init_params(kp, HIDDEN)

    B, T = 2, 8
    x = jax.random.normal(kx, (B, T, 1), dtype=jnp.float32)

    out = rnn_binary_classifier_forward(x, params)
    out = jax.block_until_ready(out)

    ref = reference_forward(x, params)
    assert out.shape == (B, 1)
    # Fused (2H-wide) accumulation changes summation order slightly vs. the
    # layer-by-layer reference, so compare at 1e-4.
    assert jnp.allclose(out, ref, atol=1e-4, rtol=1e-4), (out, ref)
    print("KERNEL_OK")
</pallas_src>

<mosaic_0001>
module attributes {stable_mosaic.version = 11 : i64} {
  func.func @rnn_classifier_kernel(%arg0: i32, %arg1: memref<8x8x1xf32, #tpu.memory_space<vmem>>, %arg2: memref<1x128xf32, #tpu.memory_space<vmem>>, %arg3: memref<1x128xf32, #tpu.memory_space<vmem>>, %arg4: memref<256x256xf32, #tpu.memory_space<vmem>>, %arg5: memref<1x128xf32, #tpu.memory_space<vmem>>, %arg6: memref<128x1xf32, #tpu.memory_space<vmem>>, %arg7: memref<1x1xf32, #tpu.memory_space<vmem>>, %arg8: memref<8x1xf32, #tpu.memory_space<vmem>>, %arg9: memref<8x256xf32, #tpu.memory_space<vmem>>) attributes {dimension_semantics = [#tpu.dimension_semantics<parallel>], iteration_bounds = array<i64: 1>, scalar_prefetch = 0 : i64, scratch_operands = 1 : i64, tpu.core_type = #tpu.core_type<tc>, window_params = [{transform_indices = @transform_0, window_bounds = array<i64: 8, 8, 1>}, {pipeline_mode = #tpu.pipeline_mode<synchronous>, transform_indices = @transform_1, window_bounds = array<i64: 1, 128>}, {pipeline_mode = #tpu.pipeline_mode<synchronous>, transform_indices = @transform_2, window_bounds = array<i64: 1, 128>}, {pipeline_mode = #tpu.pipeline_mode<synchronous>, transform_indices = @transform_3, window_bounds = array<i64: 256, 256>}, {pipeline_mode = #tpu.pipeline_mode<synchronous>, transform_indices = @transform_4, window_bounds = array<i64: 1, 128>}, {pipeline_mode = #tpu.pipeline_mode<synchronous>, transform_indices = @transform_5, window_bounds = array<i64: 128, 1>}, {pipeline_mode = #tpu.pipeline_mode<synchronous>, transform_indices = @transform_6, window_bounds = array<i64: 1, 1>}, {transform_indices = @transform_7, window_bounds = array<i64: 8, 1>}]} {
    %c0 = arith.constant 0 : index
    %c0_0 = arith.constant 0 : index
    %0 = vector.load %arg2[%c0, %c0_0] : memref<1x128xf32, #tpu.memory_space<vmem>>, vector<1x128xf32>
    %c0_1 = arith.constant 0 : index
    %c0_2 = arith.constant 0 : index
    %1 = vector.load %arg3[%c0_1, %c0_2] : memref<1x128xf32, #tpu.memory_space<vmem>>, vector<1x128xf32>
    %c0_3 = arith.constant 0 : index
    %c0_4 = arith.constant 0 : index
    %2 = vector.load %arg5[%c0_3, %c0_4] : memref<1x128xf32, #tpu.memory_space<vmem>>, vector<1x128xf32>
    %3 = vector.shape_cast %2 : vector<1x128xf32> to vector<1x128xf32>
    %4 = vector.broadcast %3 : vector<1x128xf32> to vector<8x128xf32>
    %c0_5 = arith.constant 0 : index
    %c0_6 = arith.constant 0 : index
    %c0_7 = arith.constant 0 : index
    %5 = vector.load %arg1[%c0_5, %c0_6, %c0_7] : memref<8x8x1xf32, #tpu.memory_space<vmem>>, vector<1x8x1xf32>
    %6 = vector.shape_cast %5 : vector<1x8x1xf32> to vector<8x1xf32>
    %7 = vector.broadcast %6 : vector<8x1xf32> to vector<8x128xf32>
    %8 = vector.broadcast %0 : vector<1x128xf32> to vector<8x128xf32>
    %9 = arith.mulf %7, %8 : vector<8x128xf32>
    %10 = vector.broadcast %1 : vector<1x128xf32> to vector<8x128xf32>
    %11 = arith.addf %9, %10 : vector<8x128xf32>
    %12 = math.tanh %11 : vector<8x128xf32>
    %c0_8 = arith.constant 0 : index
    %c0_9 = arith.constant 0 : index
    %13 = vector.load %arg9[%c0_8, %c0_9] : memref<8x256xf32, #tpu.memory_space<vmem>>, vector<8x128xf32>
    tpu.vector_store %arg9[%c0_8, %c0_9], %12 {strides = array<i32>} : memref<8x256xf32, #tpu.memory_space<vmem>>, vector<8x128xf32>,
    %cst = arith.constant 0.000000e+00 : f32
    %14 = vector.broadcast %cst : f32 to vector<8x128xf32>
    %c0_10 = arith.constant 0 : index
    %c128 = arith.constant 128 : index
    %15 = vector.load %arg9[%c0_10, %c128] : memref<8x256xf32, #tpu.memory_space<vmem>>, vector<8x128xf32>
    tpu.vector_store %arg9[%c0_10, %c128], %14 {strides = array<i32>} : memref<8x256xf32, #tpu.memory_space<vmem>>, vector<8x128xf32>,
    %c0_i32 = arith.constant 0 : i32
    %c1_i32 = arith.constant 1 : i32
    %16 = arith.addi %c0_i32, %c1_i32 : i32
    %17 = arith.index_cast %16 : i32 to index
    %c0_11 = arith.constant 0 : index
    %c0_12 = arith.constant 0 : index
    %18 = vector.load %arg1[%17, %c0_11, %c0_12] : memref<8x8x1xf32, #tpu.memory_space<vmem>>, vector<1x8x1xf32>
    %19 = vector.shape_cast %18 : vector<1x8x1xf32> to vector<8x1xf32>
    %20 = vector.broadcast %19 : vector<8x1xf32> to vector<8x128xf32>
    %21 = vector.broadcast %0 : vector<1x128xf32> to vector<8x128xf32>
    %22 = arith.mulf %20, %21 : vector<8x128xf32>
    %23 = vector.broadcast %1 : vector<1x128xf32> to vector<8x128xf32>
    %24 = arith.addf %22, %23 : vector<8x128xf32>
    %c0_13 = arith.constant 0 : index
    %c0_14 = arith.constant 0 : index
    %25 = vector.load %arg9[%c0_13, %c0_14] : memref<8x256xf32, #tpu.memory_space<vmem>>, vector<8x256xf32>
    %c0_15 = arith.constant 0 : index
    %c0_16 = arith.constant 0 : index
    %26 = vector.load %arg4[%c0_15, %c0_16] : memref<256x256xf32, #tpu.memory_space<vmem>>, vector<256x256xf32>
    %cst_17 = arith.constant dense<0.000000e+00> : vector<8x256xf32>
    %27 = tpu.matmul %25, %26, %cst_17 {dimension_numbers = #tpu.dot_dimension_numbers<[1], [0], [0], [1], [0, 0, 1, 1], [], []>} : vector<8x256xf32>, vector<256x256xf32>, vector<8x256xf32> -> vector<8x256xf32>
    %28 = vector.extract_strided_slice %27 {offsets = [0, 0], sizes = [8, 128], strides = [1, 1]} : vector<8x256xf32> to vector<8x128xf32>
    %29 = vector.extract_strided_slice %27 {offsets = [0, 128], sizes = [8, 128], strides = [1, 1]} : vector<8x256xf32> to vector<8x128xf32>
    %30 = arith.addf %28, %24 : vector<8x128xf32>
    %31 = math.tanh %30 : vector<8x128xf32>
    %c0_18 = arith.constant 0 : index
    %c0_19 = arith.constant 0 : index
    %32 = vector.load %arg9[%c0_18, %c0_19] : memref<8x256xf32, #tpu.memory_space<vmem>>, vector<8x128xf32>
    tpu.vector_store %arg9[%c0_18, %c0_19], %31 {strides = array<i32>} : memref<8x256xf32, #tpu.memory_space<vmem>>, vector<8x128xf32>,
    %33 = arith.addf %29, %4 : vector<8x128xf32>
    %34 = math.tanh %33 : vector<8x128xf32>
    %c0_20 = arith.constant 0 : index
    %c128_21 = arith.constant 128 : index
    %35 = vector.load %arg9[%c0_20, %c128_21] : memref<8x256xf32, #tpu.memory_space<vmem>>, vector<8x128xf32>
    tpu.vector_store %arg9[%c0_20, %c128_21], %34 {strides = array<i32>} : memref<8x256xf32, #tpu.memory_space<vmem>>, vector<8x128xf32>,
    %c1_i32_22 = arith.constant 1 : i32
    %c1_i32_23 = arith.constant 1 : i32
    %36 = arith.addi %c1_i32_22, %c1_i32_23 : i32
    %37 = arith.index_cast %36 : i32 to index
    %c0_24 = arith.constant 0 : index
    %c0_25 = arith.constant 0 : index
    %38 = vector.load %arg1[%37, %c0_24, %c0_25] : memref<8x8x1xf32, #tpu.memory_space<vmem>>, vector<1x8x1xf32>
    %39 = vector.shape_cast %38 : vector<1x8x1xf32> to vector<8x1xf32>
    %40 = vector.broadcast %39 : vector<8x1xf32> to vector<8x128xf32>
    %41 = vector.broadcast %0 : vector<1x128xf32> to vector<8x128xf32>
    %42 = arith.mulf %40, %41 : vector<8x128xf32>
    %43 = vector.broadcast %1 : vector<1x128xf32> to vector<8x128xf32>
    %44 = arith.addf %42, %43 : vector<8x128xf32>
    %c0_26 = arith.constant 0 : index
    %c0_27 = arith.constant 0 : index
    %45 = vector.load %arg9[%c0_26, %c0_27] : memref<8x256xf32, #tpu.memory_space<vmem>>, vector<8x256xf32>
    %c0_28 = arith.constant 0 : index
    %c0_29 = arith.constant 0 : index
    %46 = vector.load %arg4[%c0_28, %c0_29] : memref<256x256xf32, #tpu.memory_space<vmem>>, vector<256x256xf32>
    %cst_30 = arith.constant dense<0.000000e+00> : vector<8x256xf32>
    %47 = tpu.matmul %45, %46, %cst_30 {dimension_numbers = #tpu.dot_dimension_numbers<[1], [0], [0], [1], [0, 0, 1, 1], [], []>} : vector<8x256xf32>, vector<256x256xf32>, vector<8x256xf32> -> vector<8x256xf32>
    %48 = vector.extract_strided_slice %47 {offsets = [0, 0], sizes = [8, 128], strides = [1, 1]} : vector<8x256xf32> to vector<8x128xf32>
    %49 = vector.extract_strided_slice %47 {offsets = [0, 128], sizes = [8, 128], strides = [1, 1]} : vector<8x256xf32> to vector<8x128xf32>
    %50 = arith.addf %48, %44 : vector<8x128xf32>
    %51 = math.tanh %50 : vector<8x128xf32>
    %c0_31 = arith.constant 0 : index
    %c0_32 = arith.constant 0 : index
    %52 = vector.load %arg9[%c0_31, %c0_32] : memref<8x256xf32, #tpu.memory_space<vmem>>, vector<8x128xf32>
    tpu.vector_store %arg9[%c0_31, %c0_32], %51 {strides = array<i32>} : memref<8x256xf32, #tpu.memory_space<vmem>>, vector<8x128xf32>,
    %53 = arith.addf %49, %4 : vector<8x128xf32>
    %54 = math.tanh %53 : vector<8x128xf32>
    %c0_33 = arith.constant 0 : index
    %c128_34 = arith.constant 128 : index
    %55 = vector.load %arg9[%c0_33, %c128_34] : memref<8x256xf32, #tpu.memory_space<vmem>>, vector<8x128xf32>
    tpu.vector_store %arg9[%c0_33, %c128_34], %54 {strides = array<i32>} : memref<8x256xf32, #tpu.memory_space<vmem>>, vector<8x128xf32>,
    %c2_i32 = arith.constant 2 : i32
    %c1_i32_35 = arith.constant 1 : i32
    %56 = arith.addi %c2_i32, %c1_i32_35 : i32
    %57 = arith.index_cast %56 : i32 to index
    %c0_36 = arith.constant 0 : index
    %c0_37 = arith.constant 0 : index
    %58 = vector.load %arg1[%57, %c0_36, %c0_37] : memref<8x8x1xf32, #tpu.memory_space<vmem>>, vector<1x8x1xf32>
    %59 = vector.shape_cast %58 : vector<1x8x1xf32> to vector<8x1xf32>
    %60 = vector.broadcast %59 : vector<8x1xf32> to vector<8x128xf32>
    %61 = vector.broadcast %0 : vector<1x128xf32> to vector<8x128xf32>
    %62 = arith.mulf %60, %61 : vector<8x128xf32>
    %63 = vector.broadcast %1 : vector<1x128xf32> to vector<8x128xf32>
    %64 = arith.addf %62, %63 : vector<8x128xf32>
    %c0_38 = arith.constant 0 : index
    %c0_39 = arith.constant 0 : index
    %65 = vector.load %arg9[%c0_38, %c0_39] : memref<8x256xf32, #tpu.memory_space<vmem>>, vector<8x256xf32>
    %c0_40 = arith.constant 0 : index
    %c0_41 = arith.constant 0 : index
    %66 = vector.load %arg4[%c0_40, %c0_41] : memref<256x256xf32, #tpu.memory_space<vmem>>, vector<256x256xf32>
    %cst_42 = arith.constant dense<0.000000e+00> : vector<8x256xf32>
    %67 = tpu.matmul %65, %66, %cst_42 {dimension_numbers = #tpu.dot_dimension_numbers<[1], [0], [0], [1], [0, 0, 1, 1], [], []>} : vector<8x256xf32>, vector<256x256xf32>, vector<8x256xf32> -> vector<8x256xf32>
    %68 = vector.extract_strided_slice %67 {offsets = [0, 0], sizes = [8, 128], strides = [1, 1]} : vector<8x256xf32> to vector<8x128xf32>
    %69 = vector.extract_strided_slice %67 {offsets = [0, 128], sizes = [8, 128], strides = [1, 1]} : vector<8x256xf32> to vector<8x128xf32>
    %70 = arith.addf %68, %64 : vector<8x128xf32>
    %71 = math.tanh %70 : vector<8x128xf32>
    %c0_43 = arith.constant 0 : index
    %c0_44 = arith.constant 0 : index
    %72 = vector.load %arg9[%c0_43, %c0_44] : memref<8x256xf32, #tpu.memory_space<vmem>>, vector<8x128xf32>
    tpu.vector_store %arg9[%c0_43, %c0_44], %71 {strides = array<i32>} : memref<8x256xf32, #tpu.memory_space<vmem>>, vector<8x128xf32>,
    %73 = arith.addf %69, %4 : vector<8x128xf32>
    %74 = math.tanh %73 : vector<8x128xf32>
    %c0_45 = arith.constant 0 : index
    %c128_46 = arith.constant 128 : index
    %75 = vector.load %arg9[%c0_45, %c128_46] : memref<8x256xf32, #tpu.memory_space<vmem>>, vector<8x128xf32>
    tpu.vector_store %arg9[%c0_45, %c128_46], %74 {strides = array<i32>} : memref<8x256xf32, #tpu.memory_space<vmem>>, vector<8x128xf32>,
    %c3_i32 = arith.constant 3 : i32
    %c1_i32_47 = arith.constant 1 : i32
    %76 = arith.addi %c3_i32, %c1_i32_47 : i32
    %77 = arith.index_cast %76 : i32 to index
    %c0_48 = arith.constant 0 : index
    %c0_49 = arith.constant 0 : index
    %78 = vector.load %arg1[%77, %c0_48, %c0_49] : memref<8x8x1xf32, #tpu.memory_space<vmem>>, vector<1x8x1xf32>
    %79 = vector.shape_cast %78 : vector<1x8x1xf32> to vector<8x1xf32>
    %80 = vector.broadcast %79 : vector<8x1xf32> to vector<8x128xf32>
    %81 = vector.broadcast %0 : vector<1x128xf32> to vector<8x128xf32>
    %82 = arith.mulf %80, %81 : vector<8x128xf32>
    %83 = vector.broadcast %1 : vector<1x128xf32> to vector<8x128xf32>
    %84 = arith.addf %82, %83 : vector<8x128xf32>
    %c0_50 = arith.constant 0 : index
    %c0_51 = arith.constant 0 : index
    %85 = vector.load %arg9[%c0_50, %c0_51] : memref<8x256xf32, #tpu.memory_space<vmem>>, vector<8x256xf32>
    %c0_52 = arith.constant 0 : index
    %c0_53 = arith.constant 0 : index
    %86 = vector.load %arg4[%c0_52, %c0_53] : memref<256x256xf32, #tpu.memory_space<vmem>>, vector<256x256xf32>
    %cst_54 = arith.constant dense<0.000000e+00> : vector<8x256xf32>
    %87 = tpu.matmul %85, %86, %cst_54 {dimension_numbers = #tpu.dot_dimension_numbers<[1], [0], [0], [1], [0, 0, 1, 1], [], []>} : vector<8x256xf32>, vector<256x256xf32>, vector<8x256xf32> -> vector<8x256xf32>
    %88 = vector.extract_strided_slice %87 {offsets = [0, 0], sizes = [8, 128], strides = [1, 1]} : vector<8x256xf32> to vector<8x128xf32>
    %89 = vector.extract_strided_slice %87 {offsets = [0, 128], sizes = [8, 128], strides = [1, 1]} : vector<8x256xf32> to vector<8x128xf32>
    %90 = arith.addf %88, %84 : vector<8x128xf32>
    %91 = math.tanh %90 : vector<8x128xf32>
    %c0_55 = arith.constant 0 : index
    %c0_56 = arith.constant 0 : index
    %92 = vector.load %arg9[%c0_55, %c0_56] : memref<8x256xf32, #tpu.memory_space<vmem>>, vector<8x128xf32>
    tpu.vector_store %arg9[%c0_55, %c0_56], %91 {strides = array<i32>} : memref<8x256xf32, #tpu.memory_space<vmem>>, vector<8x128xf32>,
    %93 = arith.addf %89, %4 : vector<8x128xf32>
    %94 = math.tanh %93 : vector<8x128xf32>
    %c0_57 = arith.constant 0 : index
    %c128_58 = arith.constant 128 : index
    %95 = vector.load %arg9[%c0_57, %c128_58] : memref<8x256xf32, #tpu.memory_space<vmem>>, vector<8x128xf32>
    tpu.vector_store %arg9[%c0_57, %c128_58], %94 {strides = array<i32>} : memref<8x256xf32, #tpu.memory_space<vmem>>, vector<8x128xf32>,
    %c4_i32 = arith.constant 4 : i32
    %c1_i32_59 = arith.constant 1 : i32
    %96 = arith.addi %c4_i32, %c1_i32_59 : i32
    %97 = arith.index_cast %96 : i32 to index
    %c0_60 = arith.constant 0 : index
    %c0_61 = arith.constant 0 : index
    %98 = vector.load %arg1[%97, %c0_60, %c0_61] : memref<8x8x1xf32, #tpu.memory_space<vmem>>, vector<1x8x1xf32>
    %99 = vector.shape_cast %98 : vector<1x8x1xf32> to vector<8x1xf32>
    %100 = vector.broadcast %99 : vector<8x1xf32> to vector<8x128xf32>
    %101 = vector.broadcast %0 : vector<1x128xf32> to vector<8x128xf32>
    %102 = arith.mulf %100, %101 : vector<8x128xf32>
    %103 = vector.broadcast %1 : vector<1x128xf32> to vector<8x128xf32>
    %104 = arith.addf %102, %103 : vector<8x128xf32>
    %c0_62 = arith.constant 0 : index
    %c0_63 = arith.constant 0 : index
    %105 = vector.load %arg9[%c0_62, %c0_63] : memref<8x256xf32, #tpu.memory_space<vmem>>, vector<8x256xf32>
    %c0_64 = arith.constant 0 : index
    %c0_65 = arith.constant 0 : index
    %106 = vector.load %arg4[%c0_64, %c0_65] : memref<256x256xf32, #tpu.memory_space<vmem>>, vector<256x256xf32>
    %cst_66 = arith.constant dense<0.000000e+00> : vector<8x256xf32>
    %107 = tpu.matmul %105, %106, %cst_66 {dimension_numbers = #tpu.dot_dimension_numbers<[1], [0], [0], [1], [0, 0, 1, 1], [], []>} : vector<8x256xf32>, vector<256x256xf32>, vector<8x256xf32> -> vector<8x256xf32>
    %108 = vector.extract_strided_slice %107 {offsets = [0, 0], sizes = [8, 128], strides = [1, 1]} : vector<8x256xf32> to vector<8x128xf32>
    %109 = vector.extract_strided_slice %107 {offsets = [0, 128], sizes = [8, 128], strides = [1, 1]} : vector<8x256xf32> to vector<8x128xf32>
    %110 = arith.addf %108, %104 : vector<8x128xf32>
    %111 = math.tanh %110 : vector<8x128xf32>
    %c0_67 = arith.constant 0 : index
    %c0_68 = arith.constant 0 : index
    %112 = vector.load %arg9[%c0_67, %c0_68] : memref<8x256xf32, #tpu.memory_space<vmem>>, vector<8x128xf32>
    tpu.vector_store %arg9[%c0_67, %c0_68], %111 {strides = array<i32>} : memref<8x256xf32, #tpu.memory_space<vmem>>, vector<8x128xf32>,
    %113 = arith.addf %109, %4 : vector<8x128xf32>
    %114 = math.tanh %113 : vector<8x128xf32>
    %c0_69 = arith.constant 0 : index
    %c128_70 = arith.constant 128 : index
    %115 = vector.load %arg9[%c0_69, %c128_70] : memref<8x256xf32, #tpu.memory_space<vmem>>, vector<8x128xf32>
    tpu.vector_store %arg9[%c0_69, %c128_70], %114 {strides = array<i32>} : memref<8x256xf32, #tpu.memory_space<vmem>>, vector<8x128xf32>,
    %c5_i32 = arith.constant 5 : i32
    %c1_i32_71 = arith.constant 1 : i32
    %116 = arith.addi %c5_i32, %c1_i32_71 : i32
    %117 = arith.index_cast %116 : i32 to index
    %c0_72 = arith.constant 0 : index
    %c0_73 = arith.constant 0 : index
    %118 = vector.load %arg1[%117, %c0_72, %c0_73] : memref<8x8x1xf32, #tpu.memory_space<vmem>>, vector<1x8x1xf32>
    %119 = vector.shape_cast %118 : vector<1x8x1xf32> to vector<8x1xf32>
    %120 = vector.broadcast %119 : vector<8x1xf32> to vector<8x128xf32>
    %121 = vector.broadcast %0 : vector<1x128xf32> to vector<8x128xf32>
    %122 = arith.mulf %120, %121 : vector<8x128xf32>
    %123 = vector.broadcast %1 : vector<1x128xf32> to vector<8x128xf32>
    %124 = arith.addf %122, %123 : vector<8x128xf32>
    %c0_74 = arith.constant 0 : index
    %c0_75 = arith.constant 0 : index
    %125 = vector.load %arg9[%c0_74, %c0_75] : memref<8x256xf32, #tpu.memory_space<vmem>>, vector<8x256xf32>
    %c0_76 = arith.constant 0 : index
    %c0_77 = arith.constant 0 : index
    %126 = vector.load %arg4[%c0_76, %c0_77] : memref<256x256xf32, #tpu.memory_space<vmem>>, vector<256x256xf32>
    %cst_78 = arith.constant dense<0.000000e+00> : vector<8x256xf32>
    %127 = tpu.matmul %125, %126, %cst_78 {dimension_numbers = #tpu.dot_dimension_numbers<[1], [0], [0], [1], [0, 0, 1, 1], [], []>} : vector<8x256xf32>, vector<256x256xf32>, vector<8x256xf32> -> vector<8x256xf32>
    %128 = vector.extract_strided_slice %127 {offsets = [0, 0], sizes = [8, 128], strides = [1, 1]} : vector<8x256xf32> to vector<8x128xf32>
    %129 = vector.extract_strided_slice %127 {offsets = [0, 128], sizes = [8, 128], strides = [1, 1]} : vector<8x256xf32> to vector<8x128xf32>
    %130 = arith.addf %128, %124 : vector<8x128xf32>
    %131 = math.tanh %130 : vector<8x128xf32>
    %c0_79 = arith.constant 0 : index
    %c0_80 = arith.constant 0 : index
    %132 = vector.load %arg9[%c0_79, %c0_80] : memref<8x256xf32, #tpu.memory_space<vmem>>, vector<8x128xf32>
    tpu.vector_store %arg9[%c0_79, %c0_80], %131 {strides = array<i32>} : memref<8x256xf32, #tpu.memory_space<vmem>>, vector<8x128xf32>,
    %133 = arith.addf %129, %4 : vector<8x128xf32>
    %134 = math.tanh %133 : vector<8x128xf32>
    %c0_81 = arith.constant 0 : index
    %c128_82 = arith.constant 128 : index
    %135 = vector.load %arg9[%c0_81, %c128_82] : memref<8x256xf32, #tpu.memory_space<vmem>>, vector<8x128xf32>
    tpu.vector_store %arg9[%c0_81, %c128_82], %134 {strides = array<i32>} : memref<8x256xf32, #tpu.memory_space<vmem>>, vector<8x128xf32>,
    %c6_i32 = arith.constant 6 : i32
    %c1_i32_83 = arith.constant 1 : i32
    %136 = arith.addi %c6_i32, %c1_i32_83 : i32
    %137 = arith.index_cast %136 : i32 to index
    %c0_84 = arith.constant 0 : index
    %c0_85 = arith.constant 0 : index
    %138 = vector.load %arg1[%137, %c0_84, %c0_85] : memref<8x8x1xf32, #tpu.memory_space<vmem>>, vector<1x8x1xf32>
    %139 = vector.shape_cast %138 : vector<1x8x1xf32> to vector<8x1xf32>
    %140 = vector.broadcast %139 : vector<8x1xf32> to vector<8x128xf32>
    %141 = vector.broadcast %0 : vector<1x128xf32> to vector<8x128xf32>
    %142 = arith.mulf %140, %141 : vector<8x128xf32>
    %143 = vector.broadcast %1 : vector<1x128xf32> to vector<8x128xf32>
    %144 = arith.addf %142, %143 : vector<8x128xf32>
    %c0_86 = arith.constant 0 : index
    %c0_87 = arith.constant 0 : index
    %145 = vector.load %arg9[%c0_86, %c0_87] : memref<8x256xf32, #tpu.memory_space<vmem>>, vector<8x256xf32>
    %c0_88 = arith.constant 0 : index
    %c0_89 = arith.constant 0 : index
    %146 = vector.load %arg4[%c0_88, %c0_89] : memref<256x256xf32, #tpu.memory_space<vmem>>, vector<256x256xf32>
    %cst_90 = arith.constant dense<0.000000e+00> : vector<8x256xf32>
    %147 = tpu.matmul %145, %146, %cst_90 {dimension_numbers = #tpu.dot_dimension_numbers<[1], [0], [0], [1], [0, 0, 1, 1], [], []>} : vector<8x256xf32>, vector<256x256xf32>, vector<8x256xf32> -> vector<8x256xf32>
    %148 = vector.extract_strided_slice %147 {offsets = [0, 0], sizes = [8, 128], strides = [1, 1]} : vector<8x256xf32> to vector<8x128xf32>
    %149 = vector.extract_strided_slice %147 {offsets = [0, 128], sizes = [8, 128], strides = [1, 1]} : vector<8x256xf32> to vector<8x128xf32>
    %150 = arith.addf %148, %144 : vector<8x128xf32>
    %151 = math.tanh %150 : vector<8x128xf32>
    %c0_91 = arith.constant 0 : index
    %c0_92 = arith.constant 0 : index
    %152 = vector.load %arg9[%c0_91, %c0_92] : memref<8x256xf32, #tpu.memory_space<vmem>>, vector<8x128xf32>
    tpu.vector_store %arg9[%c0_91, %c0_92], %151 {strides = array<i32>} : memref<8x256xf32, #tpu.memory_space<vmem>>, vector<8x128xf32>,
    %153 = arith.addf %149, %4 : vector<8x128xf32>
    %154 = math.tanh %153 : vector<8x128xf32>
    %c0_93 = arith.constant 0 : index
    %c128_94 = arith.constant 128 : index
    %155 = vector.load %arg9[%c0_93, %c128_94] : memref<8x256xf32, #tpu.memory_space<vmem>>, vector<8x128xf32>
    tpu.vector_store %arg9[%c0_93, %c128_94], %154 {strides = array<i32>} : memref<8x256xf32, #tpu.memory_space<vmem>>, vector<8x128xf32>,
    %c7_i32 = arith.constant 7 : i32
    %c0_95 = arith.constant 0 : index
    %c0_96 = arith.constant 0 : index
    %156 = vector.load %arg9[%c0_95, %c0_96] : memref<8x256xf32, #tpu.memory_space<vmem>>, vector<8x256xf32>
    %c0_97 = arith.constant 0 : index
    %c128_98 = arith.constant 128 : index
    %157 = vector.load %arg4[%c0_97, %c128_98] : memref<256x256xf32, #tpu.memory_space<vmem>>, vector<256x128xf32>
    %cst_99 = arith.constant dense<0.000000e+00> : vector<8x128xf32>
    %158 = tpu.matmul %156, %157, %cst_99 {dimension_numbers = #tpu.dot_dimension_numbers<[1], [0], [0], [1], [0, 0, 1, 1], [], []>} : vector<8x256xf32>, vector<256x128xf32>, vector<8x128xf32> -> vector<8x128xf32>
    %159 = arith.addf %158, %4 : vector<8x128xf32>
    %160 = math.tanh %159 : vector<8x128xf32>
    %c0_100 = arith.constant 0 : index
    %c0_101 = arith.constant 0 : index
    %161 = vector.load %arg6[%c0_100, %c0_101] : memref<128x1xf32, #tpu.memory_space<vmem>>, vector<128x1xf32>
    %cst_102 = arith.constant dense<0.000000e+00> : vector<8x1xf32>
    %162 = tpu.matmul %160, %161, %cst_102 {dimension_numbers = #tpu.dot_dimension_numbers<[1], [0], [0], [1], [0, 0, 1, 1], [], []>} : vector<8x128xf32>, vector<128x1xf32>, vector<8x1xf32> -> vector<8x1xf32>
    %c0_103 = arith.constant 0 : index
    %c0_104 = arith.constant 0 : index
    %163 = vector.load %arg7[%c0_103, %c0_104] : memref<1x1xf32, #tpu.memory_space<vmem>>, vector<1x1xf32>
    %164 = vector.broadcast %163 : vector<1x1xf32> to vector<8x1xf32>
    %165 = arith.addf %162, %164 : vector<8x1xf32>
    %cst_105 = arith.constant 0.000000e+00 : f32
    %166 = vector.broadcast %cst_105 : f32 to vector<8x1xf32>
    %167 = arith.subf %166, %165 : vector<8x1xf32>
    %168 = math.exp %167 : vector<8x1xf32>
    %cst_106 = arith.constant 1.000000e+00 : f32
    %169 = vector.broadcast %cst_106 : f32 to vector<8x1xf32>
    %170 = arith.addf %169, %168 : vector<8x1xf32>
    %171 = tpu.reciprocal %170 : vector<8x1xf32> -> vector<8x1xf32>
    %c0_107 = arith.constant 0 : index
    %c0_108 = arith.constant 0 : index
    %172 = vector.load %arg8[%c0_107, %c0_108] : memref<8x1xf32, #tpu.memory_space<vmem>>, vector<8x1xf32>
    tpu.vector_store %arg8[%c0_107, %c0_108], %171 {strides = array<i32>} : memref<8x1xf32, #tpu.memory_space<vmem>>, vector<8x1xf32>,
    return
  }
  func.func @transform_0(%arg0: i32) -> (i32, i32, i32) {
    %c0_i32 = arith.constant 0 : i32
    %c0_i32_0 = arith.constant 0 : i32
    %c0_i32_1 = arith.constant 0 : i32
    return %c0_i32, %arg0, %c0_i32_0 : i32, i32, i32
  }
  func.func @transform_1(%arg0: i32) -> (i32, i32) {
    %c0_i32 = arith.constant 0 : i32
    %c0_i32_0 = arith.constant 0 : i32
    %c0_i32_1 = arith.constant 0 : i32
    return %c0_i32, %c0_i32_0 : i32, i32
  }
  func.func @transform_2(%arg0: i32) -> (i32, i32) {
    %c0_i32 = arith.constant 0 : i32
    %c0_i32_0 = arith.constant 0 : i32
    %c0_i32_1 = arith.constant 0 : i32
    return %c0_i32, %c0_i32_0 : i32, i32
  }
  func.func @transform_3(%arg0: i32) -> (i32, i32) {
    %c0_i32 = arith.constant 0 : i32
    %c0_i32_0 = arith.constant 0 : i32
    %c0_i32_1 = arith.constant 0 : i32
    return %c0_i32, %c0_i32_0 : i32, i32
  }
  func.func @transform_4(%arg0: i32) -> (i32, i32) {
    %c0_i32 = arith.constant 0 : i32
    %c0_i32_0 = arith.constant 0 : i32
    %c0_i32_1 = arith.constant 0 : i32
    return %c0_i32, %c0_i32_0 : i32, i32
  }
  func.func @transform_5(%arg0: i32) -> (i32, i32) {
    %c0_i32 = arith.constant 0 : i32
    %c0_i32_0 = arith.constant 0 : i32
    %c0_i32_1 = arith.constant 0 : i32
    return %c0_i32, %c0_i32_0 : i32, i32
  }
  func.func @transform_6(%arg0: i32) -> (i32, i32) {
    %c0_i32 = arith.constant 0 : i32
    %c0_i32_0 = arith.constant 0 : i32
    %c0_i32_1 = arith.constant 0 : i32
    return %c0_i32, %c0_i32_0 : i32, i32
  }
  func.func @transform_7(%arg0: i32) -> (i32, i32) {
    %c0_i32 = arith.constant 0 : i32
    %c0_i32_0 = arith.constant 0 : i32
    return %arg0, %c0_i32 : i32, i32
  }
}

</mosaic_0001>

<bundles_post_ra>
// kernel: tpu_custom_call.1
= control target key start
LH: loop header
LB: loop body
LE: loop exit
PB: predicated region body
PF: predicated region fallthrough
CT: control target
= control target key end

     0   :  { %s2555_s0 = inlined_call_operand.vmem [shape: f32[8,8,1], index: 0, kind: input, shape index: {}]   ;;  %s2556_s1 = inlined_call_operand.vmem [shape: f32[1,128], index: 1, kind: input, shape index: {}]   ;;  %s2557_s2 = inlined_call_operand.vmem [shape: f32[1,128], index: 2, kind: input, shape index: {}]   ;;  %s2558_s3 = inlined_call_operand.hbm [shape: f32[256,256], index: 3, kind: input, shape index: {}]   ;;  %s2559_s4 = inlined_call_operand.vmem [shape: f32[1,128], index: 4, kind: input, shape index: {}]   ;;  %s2560_s5 = inlined_call_operand.vmem [shape: f32[128,1], index: 5, kind: input, shape index: {}]   ;;  %s2561_s6 = inlined_call_operand.<no memory space> [shape: f32[1,1], index: 6, kind: input, shape index: {}]   ;;  %s2562_s7 = inlined_call_operand.vmem [shape: f32[8,1], index: 7, kind: output, shape index: {}]  }
   0x1   :  { %v12_v0 = vstv %s2561_s6 }
   0x2   :  { %13 = vst [vmem:[#allocation3] sm:$0x1] %v12_v0 }
   0x3   :  { %14 = vsyncpa [#allocation5], 0  ;;  %s2019_s26 = smov [#allocation4]   ;;  %s1995_s30 = scalar_lea.hbm %s2558_s3, 8192 }
   0x4   :  { %s26_s27 = sshll.u32 %s2019_s26, 4  ;;  %p1996_p0 = scmp.ne.s32.totalorder %s2558_s3, %s1995_s30  ;;  %s27_s27 = int_to_ptr.vmem [resolvable:$true] %s26_s27 }
   0x5   :  { %p1999_p1 = scmp.lt.u32.totalorder %s1995_s30, %s2558_s3 }
   0x7   :  { %p2001_p2 = pnand %p1999_p1, %p1996_p0 }
   0x9   :  { %2004 = shalt.err (!%p2001_p2)
}
   0xa   :  { %s2005_s6 = scalar_lea.vmem %s27_s27, 8192  ;;  %p2010_p4 = scmp.lt.s32.totalorder %s27_s27, %s27_s27 }
   0xb   :  { %p2006_p3 = scmp.ne.s32.totalorder %s27_s27, %s2005_s6  ;;  %p2011_p5 = scmp.lt.s32.totalorder %s2005_s6, %s2005_s6 }
   0xd   :  { %p2012_p6 = por %p2011_p5, %p2010_p4 }
   0xf   :  { %p2013_p7 = pnand %p2012_p6, %p2006_p3 }
  0x11   :  { %2016 = shalt.err (!%p2013_p7)
}
  0x12   :  { %s2020_s12 = smov 256   ;;  %s2021_s13 = smov 16  }
  0x13   :  { %32 = dma.hbm_to_vmem [thread:$0]  %s2558_s3, 8192, %s27_s27, [#allocation5], %s2020_s12, %s2020_s12, %s2021_s13  }
  0x14   :  { %2017 = dma.done.wait [#allocation5], 8192  }
  0x15   :  { %2018 = vsyncadd [#allocation5], 4294959104  ;;  %v2022_v1 = vmov 0   ;;  %v51_v2 = vld [vmem:[%s2555_s0] sm:$0xff]  ;;  %v1351_v3 = vld [vmem:[%s2555_s0 + $0x8] sm:$0xff]  ;;  %v2023_v35 = vmov 0.0  }
  0x16   :  { %1957 = vset.pattern.permute.xlu0 %v2022_v1  ;;  %1958 = vset.pattern.permute.xlu1 %v2022_v1  ;;  %v86_v4 = vld [vmem:[#allocation4 + $0x8] sm:$0xff]  ;;  %v88_v5 = vld [vmem:[#allocation4 + $0x18] sm:$0xff]  ;;  %v85_v7 = vld [vmem:[#allocation4] sm:$0xff]  ;;  %vm2025_vm0 = vmmov 0   ;;  %vm1341_vm1 = vcmask 7168  }
  0x17   :  { %54 = vperm.xlu0 %1957, %v51_v2   ;;  %v2087_v6 = vpack.c.bf16 %v88_v5, %v86_v4  ;;  %v87_v8 = vld [vmem:[#allocation4 + $0x10] sm:$0xff]  ;;  %v90_v9 = vld [vmem:[#allocation4 + $0x28] sm:$0xff]  ;;  %v92_v11 = vld [vmem:[#allocation4 + $0x38] sm:$0xff]  ;;  %213 = vmatprep.mubr.f32.mxu0 %v2023_v35 }
  0x18   :  { %v2089_v10 = vpack.c.bf16 %v87_v8, %v85_v7  ;;  %v89_v12 = vld [vmem:[#allocation4 + $0x20] sm:$0xff]  ;;  %v91_v13 = vld [vmem:[#allocation4 + $0x30] sm:$0xff]  ;;  %v2092_v14 = vpack.c.bf16 %v92_v11, %v90_v9  ;;  %v94_v15 = vld [vmem:[#allocation4 + $0x48] sm:$0xff] }
  0x19   :  { %1447 = vmatprep.subr.bf16.mxu0 %v2087_v6  ;;  %v96_v16 = vld [vmem:[#allocation4 + $0x58] sm:$0xff]  ;;  %1511 = vmatprep.subr.bf16.mxu1 %v2087_v6  ;;  %v2096_v17 = vpack.c.bf16 %v91_v13, %v89_v12  ;;  %v93_v20 = vld [vmem:[#allocation4 + $0x40] sm:$0xff]  ;;  %v95_v21 = vld [vmem:[#allocation4 + $0x50] sm:$0xff] }
  0x1a   :  { %1449 = vmatpush1.bf16.msra.mxu0 %v2089_v10  ;;  %v1354_v18 = vld [vmem:[%s2555_s0 + $0x20] sm:$0xff]  ;;  %v2102_v19 = vpack.c.bf16 %v96_v16, %v94_v15  ;;  %1513 = vmatpush1.bf16.msra.mxu1 %v2089_v10  ;;  %v98_v22 = vld [vmem:[#allocation4 + $0x68] sm:$0xff]  ;;  %v2107_v24 = vpack.c.bf16 %v95_v21, %v93_v20  ;;  %v99_v28 = vld [vmem:[#allocation4 + $0x70] sm:$0xff] }
  0x1b   :  { %78 = vperm.xlu0 %1957, %v1351_v3   ;;  %1451 = vmatprep.subr.bf16.mxu0 %v2092_v14  ;;  %v100_v23 = vld [vmem:[#allocation4 + $0x78] sm:$0xff]  ;;  %v1356_v25 = vld [vmem:[%s2555_s0 + $0x30] sm:$0xff]  ;;  %v97_v27 = vld [vmem:[#allocation4 + $0x60] sm:$0xff] }
  0x1c   :  { %1515 = vmatprep.subr.bf16.mxu1 %v2092_v14  ;;  %v2113_v26 = vpack.c.bf16 %v100_v23, %v98_v22  ;;  %v102_v29 = vld [vmem:[#allocation4 + $0x88] sm:$0xff]  ;;  %v104_v30 = vld [vmem:[#allocation4 + $0x98] sm:$0xff]  ;;  %v2118_v31 = vpack.c.bf16 %v99_v28, %v97_v27  ;;  %v101_v33 = vld [vmem:[#allocation4 + $0x80] sm:$0xff] }
  0x1d   :  { %v2121_v32 = vpack.c.bf16 %v104_v30, %v102_v29  ;;  %v103_v34 = vld [vmem:[#allocation4 + $0x90] sm:$0xff]  ;;  %v106_v36 = vld [vmem:[#allocation4 + $0xa8] sm:$0xff]  ;;  %v108_v37 = vld [vmem:[#allocation4 + $0xb8] sm:$0xff] }
  0x1e   :  { %1453 = vmatpush1.bf16.msra.mxu0 %v2096_v17  ;;  %1517 = vmatpush1.bf16.msra.mxu1 %v2096_v17  ;;  %v2127_v38 = vpack.c.bf16 %v103_v34, %v101_v33  ;;  %v2130_v39 = vpack.c.bf16 %v108_v37, %v106_v36  ;;  %v105_v40 = vld [vmem:[#allocation4 + $0xa0] sm:$0xff]  ;;  %v107_v41 = vld [vmem:[#allocation4 + $0xb0] sm:$0xff]  ;;  %v110_v42 = vld [vmem:[#allocation4 + $0xc8] sm:$0xff] }
  0x1f   :  { %534 = vperm.xlu0 %1957, %v1354_v18   ;;  %1455 = vmatprep.subr.bf16.mxu0 %v2102_v19  ;;  %v112_v43 = vld [vmem:[#allocation4 + $0xd8] sm:$0xff]  ;;  %v2135_v44 = vpack.c.bf16 %v107_v41, %v105_v40  ;;  %v109_v46 = vld [vmem:[#allocation4 + $0xc0] sm:$0xff]  ;;  %v111_v47 = vld [vmem:[#allocation4 + $0xd0] sm:$0xff] }
  0x20   :  { %1519 = vmatprep.subr.bf16.mxu1 %v2102_v19  ;;  %v2138_v45 = vpack.c.bf16 %v112_v43, %v110_v42  ;;  %v114_v48 = vld [vmem:[#allocation4 + $0xe8] sm:$0xff]  ;;  %v116_v49 = vld [vmem:[#allocation4 + $0xf8] sm:$0xff]  ;;  %v2143_v50 = vpack.c.bf16 %v111_v47, %v109_v46  ;;  %v113_v52 = vld [vmem:[#allocation4 + $0xe0] sm:$0xff] }
  0x21   :  { %v2146_v51 = vpack.c.bf16 %v116_v49, %v114_v48  ;;  %v115_v53 = vld [vmem:[#allocation4 + $0xf0] sm:$0xff]  ;;  %v118_v54 = vld [vmem:[#allocation4 + $0x108] sm:$0xff]  ;;  %v120_v55 = vld [vmem:[#allocation4 + $0x118] sm:$0xff] }
  0x22   :  { %1457 = vmatpush1.bf16.msra.mxu0 %v2107_v24  ;;  %1521 = vmatpush1.bf16.msra.mxu1 %v2107_v24  ;;  %v2151_v56 = vpack.c.bf16 %v115_v53, %v113_v52  ;;  %v2154_v57 = vpack.c.bf16 %v120_v55, %v118_v54  ;;  %v117_v58 = vld [vmem:[#allocation4 + $0x100] sm:$0xff]  ;;  %v119_v59 = vld [vmem:[#allocation4 + $0x110] sm:$0xff]  ;;  %v122_v60 = vld [vmem:[#allocation4 + $0x128] sm:$0xff] }
  0x23   :  { %838 = vperm.xlu0 %1957, %v1356_v25   ;;  %1459 = vmatprep.subr.bf16.mxu0 %v2113_v26  ;;  %v124_v61 = vld [vmem:[#allocation4 + $0x138] sm:$0xff]  ;;  %v2159_v62 = vpack.c.bf16 %v119_v59, %v117_v58  ;;  %v121_v0 = vld [vmem:[#allocation4 + $0x120] sm:$0xff]  ;;  %v123_v1 = vld [vmem:[#allocation4 + $0x130] sm:$0xff] }
  0x24   :  { %1523 = vmatprep.subr.bf16.mxu1 %v2113_v26  ;;  %v2162_v63 = vpack.c.bf16 %v124_v61, %v122_v60  ;;  %v126_v2 = vld [vmem:[#allocation4 + $0x148] sm:$0xff]  ;;  %v128_v3 = vld [vmem:[#allocation4 + $0x158] sm:$0xff]  ;;  %v2167_v4 = vpack.c.bf16 %v123_v1, %v121_v0  ;;  %v125_v7 = vld [vmem:[#allocation4 + $0x140] sm:$0xff] }
  0x25   :  { %v2170_v5 = vpack.c.bf16 %v128_v3, %v126_v2  ;;  %v127_v8 = vld [vmem:[#allocation4 + $0x150] sm:$0xff]  ;;  %v130_v9 = vld [vmem:[#allocation4 + $0x168] sm:$0xff]  ;;  %v132_v11 = vld [vmem:[#allocation4 + $0x178] sm:$0xff] }
  0x26   :  { %1461 = vmatpush1.bf16.msra.mxu0 %v2118_v31  ;;  %1525 = vmatpush1.bf16.msra.mxu1 %v2118_v31  ;;  %v2175_v12 = vpack.c.bf16 %v127_v8, %v125_v7  ;;  %v2178_v13 = vpack.c.bf16 %v132_v11, %v130_v9  ;;  %v129_v15 = vld [vmem:[#allocation4 + $0x160] sm:$0xff]  ;;  %v131_v16 = vld [vmem:[#allocation4 + $0x170] sm:$0xff]  ;;  %v134_v18 = vld [vmem:[#allocation4 + $0x188] sm:$0xff] }
  0x27   :  { %1463 = vmatprep.subr.bf16.mxu0 %v2121_v32  ;;  %1527 = vmatprep.subr.bf16.mxu1 %v2121_v32  ;;  %v136_v20 = vld [vmem:[#allocation4 + $0x198] sm:$0xff]  ;;  %v2183_v21 = vpack.c.bf16 %v131_v16, %v129_v15  ;;  %v133_v23 = vld [vmem:[#allocation4 + $0x180] sm:$0xff]  ;;  %v135_v25 = vld [vmem:[#allocation4 + $0x190] sm:$0xff] }
  0x28   :  { %v2186_v22 = vpack.c.bf16 %v136_v20, %v134_v18  ;;  %v138_v27 = vld [vmem:[#allocation4 + $0x1a8] sm:$0xff]  ;;  %v140_v28 = vld [vmem:[#allocation4 + $0x1b8] sm:$0xff]  ;;  %v2191_v29 = vpack.c.bf16 %v135_v25, %v133_v23  ;;  %v137_v33 = vld [vmem:[#allocation4 + $0x1a0] sm:$0xff] }
  0x29   :  { %v2194_v30 = vpack.c.bf16 %v140_v28, %v138_v27  ;;  %v139_v34 = vld [vmem:[#allocation4 + $0x1b0] sm:$0xff]  ;;  %v142_v36 = vld [vmem:[#allocation4 + $0x1c8] sm:$0xff]  ;;  %v144_v37 = vld [vmem:[#allocation4 + $0x1d8] sm:$0xff] }
  0x2a   :  { %1465 = vmatpush1.bf16.msra.mxu0 %v2127_v38  ;;  %1529 = vmatpush1.bf16.msra.mxu1 %v2127_v38  ;;  %v2199_v40 = vpack.c.bf16 %v139_v34, %v137_v33  ;;  %v2202_v41 = vpack.c.bf16 %v144_v37, %v142_v36  ;;  %v141_v42 = vld [vmem:[#allocation4 + $0x1c0] sm:$0xff]  ;;  %v143_v43 = vld [vmem:[#allocation4 + $0x1d0] sm:$0xff]  ;;  %v146_v46 = vld [vmem:[#allocation4 + $0x1e8] sm:$0xff] }
  0x2b   :  { %1467 = vmatprep.subr.bf16.mxu0 %v2130_v39  ;;  %1531 = vmatprep.subr.bf16.mxu1 %v2130_v39  ;;  %v148_v47 = vld [vmem:[#allocation4 + $0x1f8] sm:$0xff]  ;;  %v2207_v48 = vpack.c.bf16 %v143_v43, %v141_v42  ;;  %v145_v52 = vld [vmem:[#allocation4 + $0x1e0] sm:$0xff]  ;;  %v147_v53 = vld [vmem:[#allocation4 + $0x1f0] sm:$0xff] }
  0x2c   :  { %v2210_v49 = vpack.c.bf16 %v148_v47, %v146_v46  ;;  %v2215_v54 = vpack.c.bf16 %v147_v53, %v145_v52  ;;  %v2227_v55 = vld [vmem:[%s2556_s1] ss:$0 sm:$0xff]  ;;  %v1353_v1 = vld [vmem:[%s2555_s0 + $0x18] sm:$0xff]  ;;  %v1355_v2 = vld [vmem:[%s2555_s0 + $0x28] sm:$0xff] }
  0x2d   :  { %v2232_v59 = vld [vmem:[%s2557_s2] ss:$0 sm:$0xff]  ;;  %v1357_v3 = vld [vmem:[%s2555_s0 + $0x38] sm:$0xff]  ;;  %v701_v27 = vld [vmem:[#allocation4 + $0x40] sm:$0xff] }
  0x2e   :  { %1469 = vmatpush1.bf16.msra.mxu0 %v2135_v44  ;;  %1533 = vmatpush1.bf16.msra.mxu1 %v2135_v44  ;;  %v2284_v11 = vld [vmem:[%s2559_s4] ss:$0 sm:$0xff]  ;;  %v703_v28 = vld [vmem:[#allocation4 + $0x50] sm:$0xff]  ;;  %v705_v36 = vld [vmem:[#allocation4 + $0x60] sm:$0xff] }
  0x2f   :  { %1471 = vmatprep.subr.bf16.mxu0 %v2138_v45  ;;  %1535 = vmatprep.subr.bf16.mxu1 %v2138_v45  ;;  %v2336_v33 = vpack.c.bf16 %v703_v28, %v701_v27  ;;  %v707_v37 = vld [vmem:[#allocation4 + $0x70] sm:$0xff]  ;;  %v709_v46 = vld [vmem:[#allocation4 + $0x80] sm:$0xff] }
  0x30   :  { %v2342_v42 = vpack.c.bf16 %v707_v37, %v705_v36  ;;  %v711_v47 = vld [vmem:[#allocation4 + $0x90] sm:$0xff] }
  0x31   :  { %v2348_v52 = vpack.c.bf16 %v711_v47, %v709_v46  ;;  %v739_v27 = vld [vmem:[#allocation4 + $0x170] sm:$0xff] }
  0x32   :  { %1473 = vmatpush1.bf16.msra.mxu0 %v2143_v50  ;;  %1537 = vmatpush1.bf16.msra.mxu1 %v2143_v50 }
  0x33   :  { %1475 = vmatprep.subr.bf16.mxu0 %v2146_v51  ;;  %1539 = vmatprep.subr.bf16.mxu1 %v2146_v51 }
  0x36   :  { %1477 = vmatpush1.bf16.msra.mxu0 %v2151_v56  ;;  %1541 = vmatpush1.bf16.msra.mxu1 %v2151_v56 }
  0x37   :  { %1479 = vmatprep.subr.bf16.mxu0 %v2154_v57  ;;  %1543 = vmatprep.subr.bf16.mxu1 %v2154_v57 }
  0x3a   :  { %1481 = vmatpush1.bf16.msra.mxu0 %v2159_v62  ;;  %1545 = vmatpush1.bf16.msra.mxu1 %v2159_v62 }
  0x3b   :  { %1483 = vmatprep.subr.bf16.mxu0 %v2162_v63  ;;  %1547 = vmatprep.subr.bf16.mxu1 %v2162_v63 }
  0x3e   :  { %1485 = vmatpush1.bf16.msra.mxu0 %v2167_v4  ;;  %1549 = vmatpush1.bf16.msra.mxu1 %v2167_v4 }
  0x3f   :  { %1487 = vmatprep.subr.bf16.mxu0 %v2170_v5  ;;  %1551 = vmatprep.subr.bf16.mxu1 %v2170_v5 }
  0x42   :  { %1489 = vmatpush1.bf16.msra.mxu0 %v2175_v12  ;;  %1553 = vmatpush1.bf16.msra.mxu1 %v2175_v12 }
  0x43   :  { %1491 = vmatprep.subr.bf16.mxu0 %v2178_v13  ;;  %1555 = vmatprep.subr.bf16.mxu1 %v2178_v13 }
  0x46   :  { %1493 = vmatpush1.bf16.msra.mxu0 %v2183_v21  ;;  %1557 = vmatpush1.bf16.msra.mxu1 %v2183_v21 }
  0x47   :  { %1495 = vmatprep.subr.bf16.mxu0 %v2186_v22  ;;  %1559 = vmatprep.subr.bf16.mxu1 %v2186_v22 }
  0x4a   :  { %1497 = vmatpush1.bf16.msra.mxu0 %v2191_v29  ;;  %1561 = vmatpush1.bf16.msra.mxu1 %v2191_v29 }
  0x4b   :  { %1499 = vmatprep.subr.bf16.mxu0 %v2194_v30  ;;  %1563 = vmatprep.subr.bf16.mxu1 %v2194_v30 }
  0x4e   :  { %1501 = vmatpush1.bf16.msra.mxu0 %v2199_v40  ;;  %1565 = vmatpush1.bf16.msra.mxu1 %v2199_v40 }
  0x4f   :  { %1503 = vmatprep.subr.bf16.mxu0 %v2202_v41  ;;  %1567 = vmatprep.subr.bf16.mxu1 %v2202_v41 }
  0x52   :  { %1505 = vmatpush1.bf16.msra.mxu0 %v2207_v48  ;;  %1569 = vmatpush1.bf16.msra.mxu1 %v2207_v48 }
  0x53   :  { %1507 = vmatprep.subr.bf16.mxu0 %v2210_v49  ;;  %1571 = vmatprep.subr.bf16.mxu1 %v2210_v49 }
  0x56   :  { %1509 = vmatpush1.bf16.msra.mxu0 %v2215_v54  ;;  %1573 = vmatpush1.bf16.msra.mxu1 %v2215_v54 }
  0x57   :  { %1575 = vmatprep.subr.bf16.mxu0 %v2087_v6  ;;  %1639 = vmatprep.subr.bf16.mxu1 %v2087_v6  ;;  %v1352_v6 = vld [vmem:[%s2555_s0 + $0x10] sm:$0xff] }
  0x58   :  { %230 = vperm.xlu1 %1958, %v1352_v6  }
  0x5c   :  { %382 = vperm.xlu1 %1958, %v1353_v1   ;;  %v717_v1 = vld [vmem:[#allocation4 + $0xc0] sm:$0xff] }
  0x60   :  { %686 = vperm.xlu1 %1958, %v1355_v2   ;;  %v719_v2 = vld [vmem:[#allocation4 + $0xd0] sm:$0xff] }
  0x64   :  { %990 = vperm.xlu1 %1958, %v1357_v3   ;;  %v722_v3 = vld [vmem:[#allocation4 + $0xe8] sm:$0xff] }
  0x96   :  { %v55_v58 = vpop.permute.xlu0 %54 }
  0x97   :  { %v63_v60 = vmul.f32 %v2227_v55, %v55_v58  ;;  %v715_v58 = vld [vmem:[#allocation4 + $0xb0] sm:$0xff] }
  0x99   :  { %v70_v61 = vadd.f32 %v2232_v59, %v63_v60  ;;  %v718_v60 = vld [vmem:[#allocation4 + $0xc8] sm:$0xff] }
  0x9a   :  { %v79_v7 = vpop.permute.xlu0 %78 }
  0x9b   :  { %1959 = vtanh.f32 %v70_v61  ;;  %v81_v8 = vmul.f32 %v2227_v55, %v79_v7  ;;  %v720_v61 = vld [vmem:[#allocation4 + $0xd8] sm:$0xff] }
  0x9c   :  { %v2357_v6 = vpack.c.bf16 %v720_v61, %v718_v60  ;;  %v724_v7 = vld [vmem:[#allocation4 + $0xf8] sm:$0xff]  ;;  %v741_v60 = vld [vmem:[#allocation4 + $0x180] sm:$0xff]  ;;  %v743_v61 = vld [vmem:[#allocation4 + $0x190] sm:$0xff] }
  0x9d   :  { %v82_v9 = vadd.f32 %v2232_v59, %v81_v8  ;;  %v2360_v8 = vpack.c.bf16 %v719_v2, %v717_v1  ;;  %v2422_v1 = vpack.c.bf16 %v743_v61, %v741_v60  ;;  %v746_v2 = vld [vmem:[#allocation4 + $0x1a8] sm:$0xff] }
  0xa5   :  { %v1960_v0 = vpop.eup %1959 }
  0xa6   :  { %214 = vmatmul.mubr.f32.vlgmr.msra.gmra.mrb[0].mxu0 %v1960_v0 }
  0xa7   :  { %1577 = vmatpush1.bf16.msra.mxu0 %v2089_v10 }
  0xa8   :  { %1579 = vmatprep.subr.bf16.mxu0 %v2092_v14 }
  0xab   :  { %1581 = vmatpush1.bf16.msra.mxu0 %v2096_v17 }
  0xac   :  { %1583 = vmatprep.subr.bf16.mxu0 %v2102_v19 }
  0xaf   :  { %1585 = vmatpush1.bf16.msra.mxu0 %v2107_v24 }
  0xb0   :  { %1587 = vmatprep.subr.bf16.mxu0 %v2113_v26 }
  0xb3   :  { %1589 = vmatpush1.bf16.msra.mxu0 %v2118_v31 }
  0xb4   :  { %1591 = vmatprep.subr.bf16.mxu0 %v2121_v32 }
  0xb7   :  { %1593 = vmatpush1.bf16.msra.mxu0 %v2127_v38 }
  0xb8   :  { %1595 = vmatprep.subr.bf16.mxu0 %v2130_v39 }
  0xbb   :  { %1597 = vmatpush1.bf16.msra.mxu0 %v2135_v44 }
  0xbc   :  { %1599 = vmatprep.subr.bf16.mxu0 %v2138_v45 }
  0xbf   :  { %1601 = vmatpush1.bf16.msra.mxu0 %v2143_v50 }
  0xc0   :  { %1603 = vmatprep.subr.bf16.mxu0 %v2146_v51 }
  0xc3   :  { %1605 = vmatpush1.bf16.msra.mxu0 %v2151_v56 }
  0xc4   :  { %1607 = vmatprep.subr.bf16.mxu0 %v2154_v57 }
  0xc7   :  { %1609 = vmatpush1.bf16.msra.mxu0 %v2159_v62 }
  0xc8   :  { %1611 = vmatprep.subr.bf16.mxu0 %v2162_v63 }
  0xcb   :  { %1613 = vmatpush1.bf16.msra.mxu0 %v2167_v4 }
  0xcc   :  { %1615 = vmatprep.subr.bf16.mxu0 %v2170_v5 }
  0xcf   :  { %1617 = vmatpush1.bf16.msra.mxu0 %v2175_v12 }
  0xd0   :  { %1619 = vmatprep.subr.bf16.mxu0 %v2178_v13 }
  0xd3   :  { %1621 = vmatpush1.bf16.msra.mxu0 %v2183_v21 }
  0xd4   :  { %1623 = vmatprep.subr.bf16.mxu0 %v2186_v22 }
  0xd7   :  { %1625 = vmatpush1.bf16.msra.mxu0 %v2191_v29 }
  0xd8   :  { %1627 = vmatprep.subr.bf16.mxu0 %v2194_v30 }
  0xdb   :  { %1629 = vmatpush1.bf16.msra.mxu0 %v2199_v40 }
  0xdc   :  { %1631 = vmatprep.subr.bf16.mxu0 %v2202_v41 }
  0xdf   :  { %1633 = vmatpush1.bf16.msra.mxu0 %v2207_v48 }
  0xe0   :  { %1635 = vmatprep.subr.bf16.mxu0 %v2210_v49 }
  0xe3   :  { %1637 = vmatpush1.bf16.msra.mxu0 %v2215_v54 }
 0x179   :  { %v215_v15 = vpop.f32.mrb[0].mxu0 }
 0x17a   :  { %v220_v16 = vadd.f32 %v215_v15, %v82_v9  ;;  %v217_v18 = vpop.f32.mrb[1].mxu0  ;;  %v2363_v9 = vpack.c.bf16 %v724_v7, %v722_v3  ;;  %v721_v15 = vld [vmem:[#allocation4 + $0xe0] sm:$0xff]  ;;  %v748_v3 = vld [vmem:[#allocation4 + $0x1b8] sm:$0xff] }
 0x17b   :  { %v223_v20 = vadd.f32 %v2284_v11, %v217_v18  ;;  %v726_v18 = vld [vmem:[#allocation4 + $0x108] sm:$0xff]  ;;  %v2428_v7 = vpack.c.bf16 %v748_v3, %v746_v2 }
 0x17c   :  { %v1248_v2 = vld [vmem:[%s2560_s5 + $0x28] sm:$0xff] }
 0x17d   :  { %1961 = vtanh.f32 %v223_v20  ;;  %v728_v20 = vld [vmem:[#allocation4 + $0x118] sm:$0xff] }
 0x17e   :  { %1963 = vtanh.f32 %v220_v16  ;;  %v723_v16 = vld [vmem:[#allocation4 + $0xf0] sm:$0xff] }
 0x187   :  { %v1962_v23 = vpop.eup %1961 }
 0x188   :  { %v1964_v25 = vpop.eup %1963  ;;  %365 = vmatprep.mubr.f32.mxu1 %v1962_v23  ;;  %v2366_v23 = vpack.c.bf16 %v723_v16, %v721_v15  ;;  %v745_v15 = vld [vmem:[#allocation4 + $0x1a0] sm:$0xff]  ;;  %v747_v16 = vld [vmem:[#allocation4 + $0x1b0] sm:$0xff] }
 0x189   :  { %366 = vmatmul.mubr.f32.vlgmr.msra.gmra.mrb[0].mxu1 %v1964_v25  ;;  %v2369_v25 = vpack.c.bf16 %v728_v20, %v726_v18  ;;  %v2430_v18 = vpack.c.bf16 %v747_v16, %v745_v15  ;;  %v750_v20 = vld [vmem:[#allocation4 + $0x1c8] sm:$0xff]  ;;  %v1250_v15 = vld [vmem:[%s2560_s5 + $0x38] sm:$0xff] }
 0x18a   :  { %1641 = vmatpush1.bf16.msra.mxu1 %v2089_v10  ;;  %v231_v10 = vpop.permute.xlu1 %230 }
 0x18b   :  { %1643 = vmatprep.subr.bf16.mxu1 %v2092_v14  ;;  %v233_v14 = vmul.f32 %v2227_v55, %v231_v10  ;;  %v725_v10 = vld [vmem:[#allocation4 + $0x100] sm:$0xff] }
 0x18e   :  { %1645 = vmatpush1.bf16.msra.mxu1 %v2096_v17  ;;  %v234_v17 = vadd.f32 %v2232_v59, %v233_v14  ;;  %v727_v14 = vld [vmem:[#allocation4 + $0x110] sm:$0xff] }
 0x18f   :  { %1647 = vmatprep.subr.bf16.mxu1 %v2102_v19 }
 0x192   :  { %1649 = vmatpush1.bf16.msra.mxu1 %v2107_v24 }
 0x193   :  { %1651 = vmatprep.subr.bf16.mxu1 %v2113_v26 }
 0x196   :  { %1653 = vmatpush1.bf16.msra.mxu1 %v2118_v31 }
 0x197   :  { %1655 = vmatprep.subr.bf16.mxu1 %v2121_v32 }
 0x19a   :  { %1657 = vmatpush1.bf16.msra.mxu1 %v2127_v38 }
 0x19b   :  { %1659 = vmatprep.subr.bf16.mxu1 %v2130_v39  ;;  %v694_v39 = vld [vmem:[#allocation4 + $0x8] sm:$0xff] }
 0x19e   :  { %1661 = vmatpush1.bf16.msra.mxu1 %v2135_v44  ;;  %v696_v44 = vld [vmem:[#allocation4 + $0x18] sm:$0xff] }
 0x19f   :  { %1663 = vmatprep.subr.bf16.mxu1 %v2138_v45  ;;  %v693_v45 = vld [vmem:[#allocation4] sm:$0xff] }
 0x1a2   :  { %1665 = vmatpush1.bf16.msra.mxu1 %v2143_v50  ;;  %v2321_v50 = vpack.c.bf16 %v696_v44, %v694_v39  ;;  %v736_v39 = vld [vmem:[#allocation4 + $0x158] sm:$0xff] }
 0x1a3   :  { %1667 = vmatprep.subr.bf16.mxu1 %v2146_v51  ;;  %v695_v51 = vld [vmem:[#allocation4 + $0x10] sm:$0xff] }
 0x1a4   :  { %1703 = vmatprep.subr.bf16.mxu0 %v2321_v50 }
 0x1a6   :  { %1669 = vmatpush1.bf16.msra.mxu1 %v2151_v56  ;;  %v698_v56 = vld [vmem:[#allocation4 + $0x28] sm:$0xff] }
 0x1a7   :  { %1671 = vmatprep.subr.bf16.mxu1 %v2154_v57  ;;  %v700_v57 = vld [vmem:[#allocation4 + $0x38] sm:$0xff] }
 0x1aa   :  { %1673 = vmatpush1.bf16.msra.mxu1 %v2159_v62  ;;  %v2323_v62 = vpack.c.bf16 %v695_v51, %v693_v45  ;;  %v733_v51 = vld [vmem:[#allocation4 + $0x140] sm:$0xff] }
 0x1ab   :  { %1675 = vmatprep.subr.bf16.mxu1 %v2162_v63  ;;  %v2325_v63 = vpack.c.bf16 %v700_v57, %v698_v56  ;;  %v735_v56 = vld [vmem:[#allocation4 + $0x150] sm:$0xff]  ;;  %v738_v57 = vld [vmem:[#allocation4 + $0x168] sm:$0xff] }
 0x1ae   :  { %1677 = vmatpush1.bf16.msra.mxu1 %v2167_v4  ;;  %v697_v4 = vld [vmem:[#allocation4 + $0x20] sm:$0xff] }
 0x1af   :  { %1679 = vmatprep.subr.bf16.mxu1 %v2170_v5  ;;  %v699_v5 = vld [vmem:[#allocation4 + $0x30] sm:$0xff] }
 0x1b2   :  { %1681 = vmatpush1.bf16.msra.mxu1 %v2175_v12  ;;  %v702_v12 = vld [vmem:[#allocation4 + $0x48] sm:$0xff] }
 0x1b3   :  { %1683 = vmatprep.subr.bf16.mxu1 %v2178_v13  ;;  %v704_v13 = vld [vmem:[#allocation4 + $0x58] sm:$0xff] }
 0x1b6   :  { %1685 = vmatpush1.bf16.msra.mxu1 %v2183_v21  ;;  %v2330_v21 = vpack.c.bf16 %v699_v5, %v697_v4  ;;  %v740_v4 = vld [vmem:[#allocation4 + $0x178] sm:$0xff]  ;;  %v2384_v5 = vpack.c.bf16 %v735_v56, %v733_v51  ;;  %v753_v51 = vld [vmem:[#allocation4 + $0x1e0] sm:$0xff]  ;;  %v755_v56 = vld [vmem:[#allocation4 + $0x1f0] sm:$0xff] }
 0x1b7   :  { %1687 = vmatprep.subr.bf16.mxu1 %v2186_v22  ;;  %v2333_v22 = vpack.c.bf16 %v704_v13, %v702_v12  ;;  %v2387_v12 = vpack.c.bf16 %v740_v4, %v738_v57  ;;  %v737_v13 = vld [vmem:[#allocation4 + $0x160] sm:$0xff]  ;;  %v1764_v57 = vpack.c.bf16 %v755_v56, %v753_v51  ;;  %v535_v4 = vpop.permute.xlu0 %534  ;;  %v1258_v51 = vld [vmem:[%s2560_s5 + $0x78] sm:$0xff] }
 0x1b8   :  { %v2390_v28 = vpack.c.bf16 %v739_v27, %v737_v13  ;;  %v537_v13 = vmul.f32 %v2227_v55, %v535_v4 }
 0x1ba   :  { %1689 = vmatpush1.bf16.msra.mxu1 %v2191_v29  ;;  %v706_v29 = vld [vmem:[#allocation4 + $0x68] sm:$0xff]  ;;  %v538_v27 = vadd.f32 %v2232_v59, %v537_v13 }
 0x1bb   :  { %1691 = vmatprep.subr.bf16.mxu1 %v2194_v30  ;;  %v708_v30 = vld [vmem:[#allocation4 + $0x78] sm:$0xff] }
 0x1bc   :  { %v2339_v34 = vpack.c.bf16 %v708_v30, %v706_v29  ;;  %v383_v29 = vpop.permute.xlu1 %382 }
 0x1bd   :  { %v385_v30 = vmul.f32 %v2227_v55, %v383_v29 }
 0x1be   :  { %1693 = vmatpush1.bf16.msra.mxu1 %v2199_v40  ;;  %v710_v40 = vld [vmem:[#allocation4 + $0x88] sm:$0xff] }
 0x1bf   :  { %1695 = vmatprep.subr.bf16.mxu1 %v2202_v41  ;;  %v712_v41 = vld [vmem:[#allocation4 + $0x98] sm:$0xff]  ;;  %v386_v36 = vadd.f32 %v2232_v59, %v385_v30 }
 0x1c0   :  { %v2345_v43 = vpack.c.bf16 %v712_v41, %v710_v40 }
 0x1c2   :  { %1697 = vmatpush1.bf16.msra.mxu1 %v2207_v48  ;;  %v714_v48 = vld [vmem:[#allocation4 + $0xa8] sm:$0xff] }
 0x1c3   :  { %1699 = vmatprep.subr.bf16.mxu1 %v2210_v49  ;;  %v716_v49 = vld [vmem:[#allocation4 + $0xb8] sm:$0xff] }
 0x1c4   :  { %v2351_v53 = vpack.c.bf16 %v716_v49, %v714_v48  ;;  %v742_v49 = vld [vmem:[#allocation4 + $0x188] sm:$0xff] }
 0x1c6   :  { %1701 = vmatpush1.bf16.msra.mxu1 %v2215_v54  ;;  %v713_v54 = vld [vmem:[#allocation4 + $0xa0] sm:$0xff] }
 0x1c7   :  { %1767 = vmatprep.subr.bf16.mxu1 %v2321_v50  ;;  %v2354_v0 = vpack.c.bf16 %v715_v58, %v713_v54  ;;  %v744_v54 = vld [vmem:[#allocation4 + $0x198] sm:$0xff] }
 0x1c8   :  { %v2420_v58 = vpack.c.bf16 %v744_v54, %v742_v49  ;;  %v1244_v49 = vld [vmem:[%s2560_s5 + $0x8] sm:$0xff] }
 0x25c   :  { %v367_v19 = vpop.f32.mrb[0].mxu1 }
 0x25d   :  { %v372_v24 = vadd.f32 %v367_v19, %v234_v17  ;;  %v369_v26 = vpop.f32.mrb[1].mxu1  ;;  %v730_v17 = vld [vmem:[#allocation4 + $0x128] sm:$0xff]  ;;  %v732_v19 = vld [vmem:[#allocation4 + $0x138] sm:$0xff] }
 0x25e   :  { %v375_v31 = vadd.f32 %v2284_v11, %v369_v26  ;;  %v2375_v26 = vpack.c.bf16 %v732_v19, %v730_v17  ;;  %v751_v19 = vld [vmem:[#allocation4 + $0x1d0] sm:$0xff] }
 0x260   :  { %1965 = vtanh.f32 %v375_v31  ;;  %v729_v31 = vld [vmem:[#allocation4 + $0x120] sm:$0xff] }
 0x261   :  { %1967 = vtanh.f32 %v372_v24  ;;  %v2372_v24 = vpack.c.bf16 %v727_v14, %v725_v10  ;;  %v752_v10 = vld [vmem:[#allocation4 + $0x1d8] sm:$0xff]  ;;  %v749_v14 = vld [vmem:[#allocation4 + $0x1c0] sm:$0xff] }
 0x262   :  { %v2435_v17 = vpack.c.bf16 %v752_v10, %v750_v20  ;;  %v1252_v20 = vld [vmem:[%s2560_s5 + $0x48] sm:$0xff] }
 0x26a   :  { %v1966_v32 = vpop.eup %1965 }
 0x26b   :  { %v1968_v38 = vpop.eup %1967  ;;  %517 = vmatprep.mubr.f32.mxu0 %v1966_v32  ;;  %v731_v32 = vld [vmem:[#allocation4 + $0x130] sm:$0xff] }
 0x26c   :  { %518 = vmatmul.mubr.f32.vlgmr.msra.gmra.mrb[2].mxu0 %v1968_v38  ;;  %v734_v38 = vld [vmem:[#allocation4 + $0x148] sm:$0xff]  ;;  %v2378_v44 = vpack.c.bf16 %v731_v32, %v729_v31  ;;  %v756_v32 = vld [vmem:[#allocation4 + $0x1f8] sm:$0xff] }
 0x26d   :  { %1705 = vmatpush1.bf16.msra.mxu0 %v2323_v62  ;;  %v2381_v45 = vpack.c.bf16 %v736_v39, %v734_v38  ;;  %v754_v31 = vld [vmem:[#allocation4 + $0x1e8] sm:$0xff]  ;;  %v1760_v38 = vpack.c.bf16 %v751_v19, %v749_v14 }
 0x26e   :  { %1707 = vmatprep.subr.bf16.mxu0 %v2325_v63  ;;  %v2438_v39 = vpack.c.bf16 %v756_v32, %v754_v31  ;;  %v1253_v14 = vld [vmem:[%s2560_s5 + $0x50] sm:$0xff]  ;;  %v1255_v31 = vld [vmem:[%s2560_s5 + $0x60] sm:$0xff]  ;;  %v1256_v32 = vld [vmem:[%s2560_s5 + $0x68] sm:$0xff] }
 0x271   :  { %1709 = vmatpush1.bf16.msra.mxu0 %v2330_v21 }
 0x272   :  { %1711 = vmatprep.subr.bf16.mxu0 %v2333_v22 }
 0x275   :  { %1713 = vmatpush1.bf16.msra.mxu0 %v2336_v33 }
 0x276   :  { %1715 = vmatprep.subr.bf16.mxu0 %v2339_v34 }
 0x279   :  { %1717 = vmatpush1.bf16.msra.mxu0 %v2342_v42 }
 0x27a   :  { %1719 = vmatprep.subr.bf16.mxu0 %v2345_v43 }
 0x27d   :  { %1721 = vmatpush1.bf16.msra.mxu0 %v2348_v52 }
 0x27e   :  { %1723 = vmatprep.subr.bf16.mxu0 %v2351_v53 }
 0x281   :  { %1725 = vmatpush1.bf16.msra.mxu0 %v2354_v0 }
 0x282   :  { %1727 = vmatprep.subr.bf16.mxu0 %v2357_v6 }
 0x285   :  { %1729 = vmatpush1.bf16.msra.mxu0 %v2360_v8 }
 0x286   :  { %1731 = vmatprep.subr.bf16.mxu0 %v2363_v9 }
 0x289   :  { %1733 = vmatpush1.bf16.msra.mxu0 %v2366_v23 }
 0x28a   :  { %1735 = vmatprep.subr.bf16.mxu0 %v2369_v25 }
 0x28d   :  { %1737 = vmatpush1.bf16.msra.mxu0 %v2372_v24 }
 0x28e   :  { %1739 = vmatprep.subr.bf16.mxu0 %v2375_v26 }
 0x291   :  { %1741 = vmatpush1.bf16.msra.mxu0 %v2378_v44 }
 0x292   :  { %1743 = vmatprep.subr.bf16.mxu0 %v2381_v45 }
 0x295   :  { %1745 = vmatpush1.bf16.msra.mxu0 %v2384_v5 }
 0x296   :  { %1747 = vmatprep.subr.bf16.mxu0 %v2387_v12 }
 0x299   :  { %1749 = vmatpush1.bf16.msra.mxu0 %v2390_v28 }
 0x29a   :  { %1751 = vmatprep.subr.bf16.mxu0 %v2420_v58 }
 0x29d   :  { %1753 = vmatpush1.bf16.msra.mxu0 %v2422_v1 }
 0x29e   :  { %1755 = vmatprep.subr.bf16.mxu0 %v2428_v7 }
 0x2a1   :  { %1757 = vmatpush1.bf16.msra.mxu0 %v2430_v18 }
 0x2a2   :  { %1759 = vmatprep.subr.bf16.mxu0 %v2435_v17 }
 0x2a5   :  { %1761 = vmatpush1.bf16.msra.mxu0 %v1760_v38 }
 0x2a6   :  { %1763 = vmatprep.subr.bf16.mxu0 %v2438_v39 }
 0x2a9   :  { %1765 = vmatpush1.bf16.msra.mxu0 %v1764_v57 }
 0x2aa   :  { %1831 = vmatprep.subr.bf16.mxu0 %v2321_v50 }
 0x33f   :  { %v519_v37 = vpop.f32.mrb[2].mxu0 }
 0x340   :  { %v524_v40 = vadd.f32 %v519_v37, %v386_v36  ;;  %v521_v41 = vpop.f32.mrb[3].mxu0 }
 0x341   :  { %v527_v46 = vadd.f32 %v2284_v11, %v521_v41 }
 0x343   :  { %1969 = vtanh.f32 %v527_v46 }
 0x344   :  { %1971 = vtanh.f32 %v524_v40 }
 0x34d   :  { %v1970_v47 = vpop.eup %1969 }
 0x34e   :  { %v1972_v48 = vpop.eup %1971  ;;  %669 = vmatprep.mubr.f32.mxu1 %v1970_v47 }
 0x34f   :  { %670 = vmatmul.mubr.f32.vlgmr.msra.gmra.mrb[2].mxu1 %v1972_v48  ;;  %v1243_v48 = vld [vmem:[%s2560_s5] sm:$0xff] }
 0x350   :  { %1769 = vmatpush1.bf16.msra.mxu1 %v2323_v62  ;;  %v1927_v54 = vpack.c.bf16 %v1244_v49, %v1243_v48 }
 0x351   :  { %1771 = vmatprep.subr.bf16.mxu1 %v2325_v63 }
 0x354   :  { %1773 = vmatpush1.bf16.msra.mxu1 %v2330_v21 }
 0x355   :  { %1775 = vmatprep.subr.bf16.mxu1 %v2333_v22 }
 0x358   :  { %1777 = vmatpush1.bf16.msra.mxu1 %v2336_v33 }
 0x359   :  { %1779 = vmatprep.subr.bf16.mxu1 %v2339_v34 }
 0x35c   :  { %1781 = vmatpush1.bf16.msra.mxu1 %v2342_v42 }
 0x35d   :  { %1783 = vmatprep.subr.bf16.mxu1 %v2345_v43 }
 0x360   :  { %1785 = vmatpush1.bf16.msra.mxu1 %v2348_v52 }
 0x361   :  { %1787 = vmatprep.subr.bf16.mxu1 %v2351_v53 }
 0x364   :  { %1789 = vmatpush1.bf16.msra.mxu1 %v2354_v0 }
 0x365   :  { %1791 = vmatprep.subr.bf16.mxu1 %v2357_v6 }
 0x368   :  { %1793 = vmatpush1.bf16.msra.mxu1 %v2360_v8 }
 0x369   :  { %1795 = vmatprep.subr.bf16.mxu1 %v2363_v9 }
 0x36c   :  { %1797 = vmatpush1.bf16.msra.mxu1 %v2366_v23 }
 0x36d   :  { %1799 = vmatprep.subr.bf16.mxu1 %v2369_v25 }
 0x370   :  { %1801 = vmatpush1.bf16.msra.mxu1 %v2372_v24 }
 0x371   :  { %1803 = vmatprep.subr.bf16.mxu1 %v2375_v26 }
 0x374   :  { %1805 = vmatpush1.bf16.msra.mxu1 %v2378_v44 }
 0x375   :  { %1807 = vmatprep.subr.bf16.mxu1 %v2381_v45 }
 0x378   :  { %1809 = vmatpush1.bf16.msra.mxu1 %v2384_v5 }
 0x379   :  { %1811 = vmatprep.subr.bf16.mxu1 %v2387_v12 }
 0x37c   :  { %1813 = vmatpush1.bf16.msra.mxu1 %v2390_v28 }
 0x37d   :  { %1815 = vmatprep.subr.bf16.mxu1 %v2420_v58 }
 0x380   :  { %1817 = vmatpush1.bf16.msra.mxu1 %v2422_v1 }
 0x381   :  { %1819 = vmatprep.subr.bf16.mxu1 %v2428_v7 }
 0x384   :  { %1821 = vmatpush1.bf16.msra.mxu1 %v2430_v18 }
 0x385   :  { %1823 = vmatprep.subr.bf16.mxu1 %v2435_v17 }
 0x388   :  { %1825 = vmatpush1.bf16.msra.mxu1 %v1760_v38 }
 0x389   :  { %1827 = vmatprep.subr.bf16.mxu1 %v2438_v39 }
 0x38c   :  { %1829 = vmatpush1.bf16.msra.mxu1 %v1764_v57 }
 0x38d   :  { %1895 = vmatprep.subr.bf16.mxu1 %v2369_v25 }
 0x422   :  { %v671_v29 = vpop.f32.mrb[2].mxu1 }
 0x423   :  { %v676_v30 = vadd.f32 %v671_v29, %v538_v27  ;;  %v673_v36 = vpop.f32.mrb[3].mxu1 }
 0x424   :  { %v679_v37 = vadd.f32 %v2284_v11, %v673_v36 }
 0x426   :  { %1973 = vtanh.f32 %v679_v37 }
 0x427   :  { %1975 = vtanh.f32 %v676_v30  ;;  %v1358_v30 = vld [vmem:[#allocation3] ss:$0 sm:$0xff] }
 0x430   :  { %v1974_v40 = vpop.eup %1973 }
 0x431   :  { %v1976_v41 = vpop.eup %1975  ;;  %821 = vmatprep.mubr.f32.mxu0 %v1974_v40 }
 0x432   :  { %822 = vmatmul.mubr.f32.vlgmr.msra.gmra.mrb[4].mxu0 %v1976_v41 }
 0x433   :  { %1833 = vmatpush1.bf16.msra.mxu0 %v2323_v62  ;;  %v687_v62 = vpop.permute.xlu1 %686 }
 0x434   :  { %1835 = vmatprep.subr.bf16.mxu0 %v2325_v63 }
 0x437   :  { %1837 = vmatpush1.bf16.msra.mxu0 %v2330_v21  ;;  %v689_v21 = vmul.f32 %v2227_v55, %v687_v62 }
 0x438   :  { %1839 = vmatprep.subr.bf16.mxu0 %v2333_v22 }
 0x43b   :  { %1841 = vmatpush1.bf16.msra.mxu0 %v2336_v33  ;;  %v690_v33 = vadd.f32 %v2232_v59, %v689_v21 }
 0x43c   :  { %1843 = vmatprep.subr.bf16.mxu0 %v2339_v34 }
 0x43f   :  { %1845 = vmatpush1.bf16.msra.mxu0 %v2342_v42 }
 0x440   :  { %1847 = vmatprep.subr.bf16.mxu0 %v2345_v43 }
 0x443   :  { %1849 = vmatpush1.bf16.msra.mxu0 %v2348_v52 }
 0x444   :  { %1851 = vmatprep.subr.bf16.mxu0 %v2351_v53 }
 0x447   :  { %1853 = vmatpush1.bf16.msra.mxu0 %v2354_v0 }
 0x448   :  { %1855 = vmatprep.subr.bf16.mxu0 %v2357_v6 }
 0x44b   :  { %1857 = vmatpush1.bf16.msra.mxu0 %v2360_v8 }
 0x44c   :  { %1859 = vmatprep.subr.bf16.mxu0 %v2363_v9 }
 0x44f   :  { %1861 = vmatpush1.bf16.msra.mxu0 %v2366_v23 }
 0x450   :  { %1863 = vmatprep.subr.bf16.mxu0 %v2369_v25 }
 0x453   :  { %1865 = vmatpush1.bf16.msra.mxu0 %v2372_v24 }
 0x454   :  { %1867 = vmatprep.subr.bf16.mxu0 %v2375_v26 }
 0x457   :  { %1869 = vmatpush1.bf16.msra.mxu0 %v2378_v44 }
 0x458   :  { %1871 = vmatprep.subr.bf16.mxu0 %v2381_v45 }
 0x45b   :  { %1873 = vmatpush1.bf16.msra.mxu0 %v2384_v5 }
 0x45c   :  { %1875 = vmatprep.subr.bf16.mxu0 %v2387_v12 }
 0x45f   :  { %1877 = vmatpush1.bf16.msra.mxu0 %v2390_v28 }
 0x460   :  { %1879 = vmatprep.subr.bf16.mxu0 %v2420_v58 }
 0x463   :  { %1881 = vmatpush1.bf16.msra.mxu0 %v2422_v1  ;;  %v1247_v1 = vld [vmem:[%s2560_s5 + $0x20] sm:$0xff] }
 0x464   :  { %1883 = vmatprep.subr.bf16.mxu0 %v2428_v7  ;;  %v1933_v3 = vpack.c.bf16 %v1248_v2, %v1247_v1 }
 0x467   :  { %1885 = vmatpush1.bf16.msra.mxu0 %v2430_v18  ;;  %v1251_v18 = vld [vmem:[%s2560_s5 + $0x40] sm:$0xff] }
 0x468   :  { %1887 = vmatprep.subr.bf16.mxu0 %v2435_v17  ;;  %v1939_v10 = vpack.c.bf16 %v1252_v20, %v1251_v18 }
 0x46b   :  { %1889 = vmatpush1.bf16.msra.mxu0 %v1760_v38  ;;  %v1945_v38 = vpack.c.bf16 %v1256_v32, %v1255_v31 }
 0x46c   :  { %1891 = vmatprep.subr.bf16.mxu0 %v2438_v39 }
 0x46f   :  { %1893 = vmatpush1.bf16.msra.mxu0 %v1764_v57 }
 0x505   :  { %v823_v42 = vpop.f32.mrb[4].mxu0 }
 0x506   :  { %v828_v52 = vadd.f32 %v823_v42, %v690_v33  ;;  %v825_v0 = vpop.f32.mrb[5].mxu0 }
 0x507   :  { %v831_v8 = vadd.f32 %v2284_v11, %v825_v0 }
 0x509   :  { %1977 = vtanh.f32 %v831_v8 }
 0x50a   :  { %1979 = vtanh.f32 %v828_v52 }
 0x513   :  { %v1978_v23 = vpop.eup %1977 }
 0x514   :  { %v1980_v25 = vpop.eup %1979  ;;  %973 = vmatprep.mubr.f32.mxu1 %v1978_v23 }
 0x515   :  { %974 = vmatmul.mubr.f32.vlgmr.msra.gmra.mrb[4].mxu1 %v1980_v25 }
 0x516   :  { %1897 = vmatpush3.bf16.msra.mxu1 %v2321_v50  ;;  %v839_v50 = vpop.permute.xlu0 %838 }
 0x517   :  { %1899 = vmatprep.subr.bf16.mxu1 %v2375_v26 }
 0x51a   :  { %1901 = vmatpush3.bf16.msra.mxu1 %v2325_v63  ;;  %v841_v63 = vmul.f32 %v2227_v55, %v839_v50 }
 0x51b   :  { %1903 = vmatprep.subr.bf16.mxu1 %v2381_v45  ;;  %v991_v45 = vpop.permute.xlu1 %990 }
 0x51e   :  { %1905 = vmatpush3.bf16.msra.mxu1 %v2333_v22  ;;  %v842_v22 = vadd.f32 %v2232_v59, %v841_v63 }
 0x51f   :  { %1907 = vmatprep.subr.bf16.mxu1 %v2387_v12 }
 0x522   :  { %1909 = vmatpush3.bf16.msra.mxu1 %v2339_v34 }
 0x523   :  { %1911 = vmatprep.subr.bf16.mxu1 %v2420_v58 }
 0x526   :  { %1913 = vmatpush3.bf16.msra.mxu1 %v2345_v43 }
 0x527   :  { %1915 = vmatprep.subr.bf16.mxu1 %v2428_v7  ;;  %v1249_v7 = vld [vmem:[%s2560_s5 + $0x30] sm:$0xff] }
 0x528   :  { %v1936_v16 = vpack.c.bf16 %v1250_v15, %v1249_v7 }
 0x52a   :  { %1917 = vmatpush3.bf16.msra.mxu1 %v2351_v53 }
 0x52b   :  { %1919 = vmatprep.subr.bf16.mxu1 %v2435_v17  ;;  %v1254_v17 = vld [vmem:[%s2560_s5 + $0x58] sm:$0xff] }
 0x52c   :  { %v1942_v19 = vpack.c.bf16 %v1254_v17, %v1253_v14 }
 0x52e   :  { %1921 = vmatpush3.bf16.msra.mxu1 %v2357_v6  ;;  %v2024_v6 = vmov 0.0|0.0  }
 0x52f   :  { %1923 = vmatprep.subr.bf16.mxu1 %v2438_v39  ;;  %v1257_v39 = vld [vmem:[%s2560_s5 + $0x70] sm:$0xff] }
 0x530   :  { %v1948_v56 = vpack.c.bf16 %v1258_v51, %v1257_v39 }
 0x532   :  { %1925 = vmatpush3.bf16.msra.mxu1 %v2363_v9  ;;  %v993_v9 = vmul.f32 %v2227_v55, %v991_v45  ;;  %v1245_v55 = vld [vmem:[%s2560_s5 + $0x10] sm:$0xff] }
 0x533   :  { %1926 = vmatprep.subr.bf16.mxu1 %v2024_v6 }
 0x534   :  { %v994_v5 = vadd.f32 %v2232_v59, %v993_v9  ;;  %v1246_v59 = vld [vmem:[%s2560_s5 + $0x18] sm:$0xff] }
 0x535   :  { %v1930_v61 = vpack.c.bf16 %v1246_v59, %v1245_v55 }
 0x5e8   :  { %v975_v34 = vpop.f32.mrb[4].mxu1 }
 0x5e9   :  { %v980_v24 = vadd.f32 %v975_v34, %v842_v22  ;;  %v977_v43 = vpop.f32.mrb[5].mxu1 }
 0x5ea   :  { %v983_v26 = vadd.f32 %v2284_v11, %v977_v43 }
 0x5ec   :  { %1981 = vtanh.f32 %v983_v26 }
 0x5ed   :  { %1983 = vtanh.f32 %v980_v24 }
 0x5f6   :  { %v1982_v53 = vpop.eup %1981 }
 0x5f7   :  { %v1984_v44 = vpop.eup %1983  ;;  %1125 = vmatprep.mubr.f32.mxu0 %v1982_v53 }
 0x5f8   :  { %1126 = vmatmul.mubr.f32.vlgmr.msra.gmra.mrb[6].mxu0 %v1984_v44 }
 0x6cb   :  { %v1127_v12 = vpop.f32.mrb[6].mxu0 }
 0x6cc   :  { %v1132_v28 = vadd.f32 %v1127_v12, %v994_v5  ;;  %v1129_v46 = vpop.f32.mrb[7].mxu0 }
 0x6cd   :  { %v1135_v47 = vadd.f32 %v2284_v11, %v1129_v46 }
 0x6cf   :  { %1985 = vtanh.f32 %v1135_v47 }
 0x6d0   :  { %1987 = vtanh.f32 %v1132_v28 }
 0x6d9   :  { %v1986_v58 = vpop.eup %1985 }
 0x6da   :  { %v1988_v60 = vpop.eup %1987  ;;  %1236 = vmatprep.mubr.f32.mxu1 %v1986_v58 }
 0x6db   :  { %1237 = vmatmul.mubr.f32.vlgmr.msra.gmra.mrb[6].mxu1 %v1988_v60 }
 0x6dc   :  { %1928 = vmatpush3.bf16.msra.mxu1 %v1927_v54  ;;  %1443 = vmatprep.mubr.msk.f32.mxu1 %vm2025_vm0, %v2023_v35 }
 0x6dd   :  { %1929 = vmatprep.subr.bf16.mxu1 %v2024_v6 }
 0x6e0   :  { %1931 = vmatpush3.bf16.msra.mxu1 %v1930_v61 }
 0x6e1   :  { %1932 = vmatprep.subr.bf16.mxu1 %v2024_v6 }
 0x6e4   :  { %1934 = vmatpush3.bf16.msra.mxu1 %v1933_v3 }
 0x6e5   :  { %1935 = vmatprep.subr.bf16.mxu1 %v2024_v6 }
 0x6e8   :  { %1937 = vmatpush3.bf16.msra.mxu1 %v1936_v16 }
 0x6e9   :  { %1938 = vmatprep.subr.bf16.mxu1 %v2024_v6 }
 0x6ec   :  { %1940 = vmatpush3.bf16.msra.mxu1 %v1939_v10 }
 0x6ed   :  { %1941 = vmatprep.subr.bf16.mxu1 %v2024_v6 }
 0x6f0   :  { %1943 = vmatpush3.bf16.msra.mxu1 %v1942_v19 }
 0x6f1   :  { %1944 = vmatprep.subr.bf16.mxu1 %v2024_v6 }
 0x6f4   :  { %1946 = vmatpush3.bf16.msra.mxu1 %v1945_v38 }
 0x6f5   :  { %1947 = vmatprep.subr.bf16.mxu1 %v2024_v6 }
 0x6f8   :  { %1949 = vmatpush3.bf16.msra.mxu1 %v1948_v56 }
 0x7ae   :  { %v1391_v57 = vpop.f32.mrb[6].mxu1 }
 0x7af   :  { %v1392_v4 = vpop.f32.mrb[7].mxu1 }
 0x7b0   :  { %v1393_v13 = vadd.f32 %v1392_v4, %v1391_v57 }
 0x7b2   :  { %v1239_v27 = vadd.f32 %v1393_v13, %v2284_v11 }
 0x7b4   :  { %1989 = vtanh.f32 %v1239_v27 }
 0x7be   :  { %v1990_v29 = vpop.eup %1989 }
 0x7bf   :  { %1444 = vmatmul.mubr.f32.vlgmr.msra.gmra.mrb[8].mxu1 %v1990_v29 }
 0x892   :  { %v1332_v36 = vpop.f32.mrb[8].mxu1 }
 0x893   :  { %v1333_v37 = vadd.f32 %v1358_v30, %v1332_v36  ;;  %v1445_v40 = vpop.f32.mrb[9].mxu1 }
 0x895   :  { %v1336_v41 = vsub.f32 0.0, %v1333_v37 }
 0x897   :  { %v1337_v62 = vmul.f32 1.442695, %v1336_v41 }
 0x899   :  { %1991 = vpow2.f32 %v1337_v62 }
 0x8a3   :  { %v1992_v35 = vpop.eup %1991 }
 0x8a4   :  { %v1339_v21 = vadd.f32 1.0, %v1992_v35 }
 0x8a6   :  { %1993 = vrcp.f32 %v1339_v21 }
 0x8b0   :  { %v1994_v33 = vpop.eup %1993 }
 0x8b1   :  { %1342 = vst.msk [vmem:[%s2562_s7] sm:$0xff] %vm1341_vm1, %v1994_v33 }
 0x8b2   :  { %1347 = vsyncpa [#allocation5], 1 }

</bundles_post_ra>
